<compile_context>
chip_gen: v5e
topology: v5e:2x2
jax: 0.10.0
libtpu: 0.0.40
codegen_flags: <defaults>
</compile_context>

<pallas_src>
import functools

import jax
import jax.numpy as jnp
from jax.experimental import pallas as pl
from jax.experimental.pallas import tpu as pltpu


def _softplus(x):
    # numerically-stable softplus, matches F.softplus default semantics
    return jnp.maximum(x, 0.0) + jnp.log1p(jnp.exp(-jnp.abs(x)))


def _round_up(a, b):
    return (a + b - 1) // b * b


def _cdiv(a, b):
    return -(-a // b)


def _block_diag(w, p):
    """Tile a (k, m) weight into a (p*k, p*m) block-diagonal weight (p copies)."""
    if p == 1:
        return w
    k, m = w.shape
    out = jnp.zeros((p, k, p, m), w.dtype)
    idx = jnp.arange(p)
    out = out.at[idx, :, idx, :].set(w)          # out[i, :, i, :] = w
    return out.reshape(p * k, p * m)


def _decoder_kernel(x_ref, zb_ref,
                    w1_ref,
                    w2_ref, b2_ref,
                    w3_ref, b3_ref,
                    wmu_ref, bmu_ref,
                    wsg_ref, bsg_ref,
                    mu_ref, sig_ref):
    """One grid step: (1 batch, tn packed rows); each packed row holds P points."""
    x = x_ref[0]                                   # (tn, P*x_dim)
    zb = zb_ref[0]                                 # (1, P*h_dim)  per-batch layer-1 bias

    # hidden MLP: 3 x (Linear + ReLU); layer-1's z contribution is the zb bias
    h = jnp.dot(x, w1_ref[...], preferred_element_type=jnp.float32) + zb
    h = jnp.maximum(h, 0.0)
    h = jnp.dot(h, w2_ref[...], preferred_element_type=jnp.float32) + b2_ref[...]
    h = jnp.maximum(h, 0.0)
    h = jnp.dot(h, w3_ref[...], preferred_element_type=jnp.float32) + b3_ref[...]
    h = jnp.maximum(h, 0.0)

    # separate heads -> two outputs, written once (no wrapper-side split pass)
    mu_ref[0] = jnp.dot(h, wmu_ref[...], preferred_element_type=jnp.float32) + bmu_ref[...]
    pre_sig = jnp.dot(h, wsg_ref[...], preferred_element_type=jnp.float32) + bsg_ref[...]
    sig_ref[0] = 0.1 + 0.9 * _softplus(pre_sig)


@functools.partial(jax.jit, static_argnames=("tile_rows",))
def decoder_forward(x, z, params, tile_rows=256):
    """x: (B, N, x_dim), z: (B, r_dim) -> (mu, sigma): (B, N, y_dim) each."""
    B, N, x_dim = x.shape
    (w1, b1, w2, b2, w3, b3, wmu, bmu, wsg, bsg) = params
    h_dim = w1.shape[1]
    y_dim = wmu.shape[1]

    # ---- split layer 1: z-part becomes a tiny per-batch bias (no concat in HBM) ----
    w1x = w1[:x_dim]                               # (x_dim, h_dim)
    w1z = w1[x_dim:]                               # (r_dim, h_dim)
    zb = z @ w1z + b1                              # (B, h_dim)

    # ---- pick the lane-packing factor (P points per 128-lane row) ----
    if 128 % x_dim == 0 and x_dim < 128:
        P = 128 // x_dim
    else:
        P = 1
    if P * h_dim > 2048:                           # don't blow up weights if h_dim is big
        P = 1

    # ---- lane-pack P points per row (free contiguous reshape; tiny pad only if ragged) ----
    Npad = _round_up(N, P)
    if Npad != N:
        x = jnp.pad(x, ((0, 0), (0, Npad - N), (0, 0)))
    Nb = Npad // P
    xp = x.reshape(B, Nb, P * x_dim)

    zbp = jnp.tile(zb, (1, P)).reshape(B, 1, P * h_dim)
    w1p = _block_diag(w1x, P)                      # (P*x_dim, P*h_dim)
    w2p = _block_diag(w2, P)
    b2p = jnp.tile(b2, (1, P))
    w3p = _block_diag(w3, P)
    b3p = jnp.tile(b3, (1, P))
    wmup = _block_diag(wmu, P)                     # (P*h_dim, P*y_dim)
    bmup = jnp.tile(bmu, (1, P))
    wsgp = _block_diag(wsg, P)
    bsgp = jnp.tile(bsg, (1, P))

    # ---- row-tile sizing: keep tiles large; cdiv grid handles the ragged tail ----
    tile_rows = max(8, (tile_rows // 8) * 8)
    tn = Nb if Nb <= tile_rows else tile_rows      # tn == Nb (full dim) or multiple of 8
    # v7x has 2 TensorCores: make sure there are >= 2 comparable grid steps when B == 1.
    if B == 1 and Nb > 8 and _cdiv(Nb, tn) < 2:
        tn = _round_up(_cdiv(Nb, 2), 8)
    grid_rows = _cdiv(Nb, tn)

    const = lambda shape: pl.BlockSpec(shape, lambda b, n: (0, 0))

    mu_p, sig_p = pl.pallas_call(
        _decoder_kernel,
        out_shape=(jax.ShapeDtypeStruct((B, Nb, P * y_dim), jnp.float32),
                   jax.ShapeDtypeStruct((B, Nb, P * y_dim), jnp.float32)),
        grid_spec=pltpu.PrefetchScalarGridSpec(
            num_scalar_prefetch=0,
            grid=(B, grid_rows),
            in_specs=[
                pl.BlockSpec((1, tn, P * x_dim), lambda b, n: (b, n, 0)),   # packed x rows
                pl.BlockSpec((1, 1, P * h_dim), lambda b, n: (b, 0, 0)),    # per-batch z bias
                const((P * x_dim, P * h_dim)),                              # layer 1 (x part)
                const((P * h_dim, P * h_dim)), const((1, P * h_dim)),       # layer 2
                const((P * h_dim, P * h_dim)), const((1, P * h_dim)),       # layer 3
                const((P * h_dim, P * y_dim)), const((1, P * y_dim)),       # mu head
                const((P * h_dim, P * y_dim)), const((1, P * y_dim)),       # sigma head
            ],
            out_specs=[
                pl.BlockSpec((1, tn, P * y_dim), lambda b, n: (b, n, 0)),
                pl.BlockSpec((1, tn, P * y_dim), lambda b, n: (b, n, 0)),
            ],
        ),
        compiler_params=pltpu.CompilerParams(
            dimension_semantics=("parallel", "parallel"),
            vmem_limit_bytes=32 * 1024 * 1024),
    )(xp, zbp, w1p, w2p, b2p, w3p, b3p, wmup, bmup, wsgp, bsgp)

    # free contiguous reshapes back to (B, Npad, y_dim); slice only if N was ragged
    mu = mu_p.reshape(B, Npad, y_dim)
    sigma = sig_p.reshape(B, Npad, y_dim)
    if Npad != N:
        mu = mu[:, :N]
        sigma = sigma[:, :N]
    return mu, sigma


def init_params(key, x_dim, r_dim, h_dim, y_dim):
    """Deterministic nn.Linear-style init (uniform +-1/sqrt(fan_in))."""
    def linear(key, fan_in, fan_out):
        kw, kb = jax.random.split(key)
        bound = 1.0 / jnp.sqrt(fan_in)
        w = jax.random.uniform(kw, (fan_in, fan_out), jnp.float32, -bound, bound)
        b = jax.random.uniform(kb, (1, fan_out), jnp.float32, -bound, bound)
        return w, b

    keys = jax.random.split(key, 5)
    w1, b1 = linear(keys[0], x_dim + r_dim, h_dim)
    w2, b2 = linear(keys[1], h_dim, h_dim)
    w3, b3 = linear(keys[2], h_dim, h_dim)
    wmu, bmu = linear(keys[3], h_dim, y_dim)
    wsg, bsg = linear(keys[4], h_dim, y_dim)
    return (w1, b1, w2, b2, w3, b3, wmu, bmu, wsg, bsg)


def reference_forward(x, z, params):
    """Pure-JAX reference of the PyTorch forward for a sanity check."""
    (w1, b1, w2, b2, w3, b3, wmu, bmu, wsg, bsg) = params
    B, N, _ = x.shape
    z_rep = jnp.broadcast_to(z[:, None, :], (B, N, z.shape[-1]))
    xz = jnp.concatenate([x, z_rep], axis=-1).reshape(B * N, -1)
    h = jax.nn.relu(xz @ w1 + b1)
    h = jax.nn.relu(h @ w2 + b2)
    h = jax.nn.relu(h @ w3 + b3)
    mu = (h @ wmu + bmu).reshape(B, N, -1)
    pre_sigma = (h @ wsg + bsg).reshape(B, N, -1)
    sigma = 0.1 + 0.9 * jax.nn.softplus(pre_sigma)
    return mu, sigma


def _check(name, got, want, atol=1e-4, rtol=1e-4):
    assert got.shape == want.shape, f"{name} shape {got.shape} vs {want.shape}"
    assert jnp.allclose(got, want, atol=atol, rtol=rtol), f"{name} mismatch"


if __name__ == "__main__":
    # small shapes consistent with the module
    x_dim, r_dim, h_dim, y_dim = 8, 8, 32, 4

    key = jax.random.PRNGKey(0)
    kp, kd = jax.random.split(key)
    params = init_params(kp, x_dim, r_dim, h_dim, y_dim)

    # test 1: small N (padded up to one packed row of 16 points)
    batch, num_points = 2, 8
    kx, kz = jax.random.split(kd)
    x = jax.random.normal(kx, (batch, num_points, x_dim), jnp.float32)
    z = jax.random.normal(kz, (batch, r_dim), jnp.float32)
    mu, sigma = decoder_forward(x, z, params)
    jax.block_until_ready((mu, sigma))
    mu_ref, sigma_ref = reference_forward(x, z, params)
    _check("mu", mu, mu_ref)
    _check("sigma", sigma, sigma_ref)

    # test 2: ragged N (pad to pack factor, then slice the tail off)
    kx2, kz2 = jax.random.split(kx)
    x2 = jax.random.normal(kx2, (batch, 13, x_dim), jnp.float32)
    z2 = jax.random.normal(kz2, (batch, r_dim), jnp.float32)
    mu2, sigma2 = decoder_forward(x2, z2, params)
    jax.block_until_ready((mu2, sigma2))
    mu2_ref, sigma2_ref = reference_forward(x2, z2, params)
    _check("mu(ragged)", mu2, mu2_ref)
    _check("sigma(ragged)", sigma2, sigma2_ref)

    # test 3: multi row-tile path (small tile_rows to force grid_rows > 1, even division)
    kx3, kz3 = jax.random.split(kx2)
    x3 = jax.random.normal(kx3, (batch, 256, x_dim), jnp.float32)
    z3 = jax.random.normal(kz3, (batch, r_dim), jnp.float32)
    mu3, sigma3 = decoder_forward(x3, z3, params, tile_rows=8)
    jax.block_until_ready((mu3, sigma3))
    mu3_ref, sigma3_ref = reference_forward(x3, z3, params)
    _check("mu(multitile)", mu3, mu3_ref)
    _check("sigma(multitile)", sigma3, sigma3_ref)

    # test 4: partial trailing row tile handled by the cdiv grid (no pad to the tile)
    kx4, kz4 = jax.random.split(kx3)
    x4 = jax.random.normal(kx4, (batch, 200, x_dim), jnp.float32)
    z4 = jax.random.normal(kz4, (batch, r_dim), jnp.float32)
    mu4, sigma4 = decoder_forward(x4, z4, params, tile_rows=8)
    jax.block_until_ready((mu4, sigma4))
    mu4_ref, sigma4_ref = reference_forward(x4, z4, params)
    _check("mu(partial)", mu4, mu4_ref)
    _check("sigma(partial)", sigma4, sigma4_ref)

    print("KERNEL_OK")
</pallas_src>

<mosaic_0001>
module attributes {stable_mosaic.version = 11 : i64} {
  func.func @_decoder_kernel(%arg0: i32, %arg1: i32, %arg2: memref<1x1x128xf32, #tpu.memory_space<vmem>>, %arg3: memref<1x1x512xf32, #tpu.memory_space<vmem>>, %arg4: memref<128x512xf32, #tpu.memory_space<vmem>>, %arg5: memref<512x512xf32, #tpu.memory_space<vmem>>, %arg6: memref<1x512xf32, #tpu.memory_space<vmem>>, %arg7: memref<512x512xf32, #tpu.memory_space<vmem>>, %arg8: memref<1x512xf32, #tpu.memory_space<vmem>>, %arg9: memref<512x64xf32, #tpu.memory_space<vmem>>, %arg10: memref<1x64xf32, #tpu.memory_space<vmem>>, %arg11: memref<512x64xf32, #tpu.memory_space<vmem>>, %arg12: memref<1x64xf32, #tpu.memory_space<vmem>>, %arg13: memref<1x1x64xf32, #tpu.memory_space<vmem>>, %arg14: memref<1x1x64xf32, #tpu.memory_space<vmem>>) attributes {dimension_semantics = [#tpu.dimension_semantics<parallel>, #tpu.dimension_semantics<parallel>], iteration_bounds = array<i64: 2, 1>, scalar_prefetch = 0 : i64, scratch_operands = 0 : i64, tpu.core_type = #tpu.core_type<tc>, window_params = [{transform_indices = @transform_0, window_bounds = array<i64: 1, 1, 128>}, {transform_indices = @transform_1, window_bounds = array<i64: 1, 1, 512>}, {pipeline_mode = #tpu.pipeline_mode<synchronous>, transform_indices = @transform_2, window_bounds = array<i64: 128, 512>}, {pipeline_mode = #tpu.pipeline_mode<synchronous>, transform_indices = @transform_3, window_bounds = array<i64: 512, 512>}, {pipeline_mode = #tpu.pipeline_mode<synchronous>, transform_indices = @transform_4, window_bounds = array<i64: 1, 512>}, {pipeline_mode = #tpu.pipeline_mode<synchronous>, transform_indices = @transform_5, window_bounds = array<i64: 512, 512>}, {pipeline_mode = #tpu.pipeline_mode<synchronous>, transform_indices = @transform_6, window_bounds = array<i64: 1, 512>}, {pipeline_mode = #tpu.pipeline_mode<synchronous>, transform_indices = @transform_7, window_bounds = array<i64: 512, 64>}, {pipeline_mode = #tpu.pipeline_mode<synchronous>, transform_indices = @transform_8, window_bounds = array<i64: 1, 64>}, {pipeline_mode = #tpu.pipeline_mode<synchronous>, transform_indices = @transform_9, window_bounds = array<i64: 512, 64>}, {pipeline_mode = #tpu.pipeline_mode<synchronous>, transform_indices = @transform_10, window_bounds = array<i64: 1, 64>}, {transform_indices = @transform_11, window_bounds = array<i64: 1, 1, 64>}, {transform_indices = @transform_12, window_bounds = array<i64: 1, 1, 64>}]} {
    %c0 = arith.constant 0 : index
    %c0_0 = arith.constant 0 : index
    %c0_1 = arith.constant 0 : index
    %0 = vector.load %arg2[%c0, %c0_0, %c0_1] : memref<1x1x128xf32, #tpu.memory_space<vmem>>, vector<1x1x128xf32>
    %1 = vector.shape_cast %0 : vector<1x1x128xf32> to vector<1x128xf32>
    %c0_2 = arith.constant 0 : index
    %c0_3 = arith.constant 0 : index
    %c0_4 = arith.constant 0 : index
    %2 = vector.load %arg3[%c0_2, %c0_3, %c0_4] : memref<1x1x512xf32, #tpu.memory_space<vmem>>, vector<1x1x512xf32>
    %3 = vector.shape_cast %2 : vector<1x1x512xf32> to vector<1x512xf32>
    %c0_5 = arith.constant 0 : index
    %c0_6 = arith.constant 0 : index
    %4 = vector.load %arg4[%c0_5, %c0_6] : memref<128x512xf32, #tpu.memory_space<vmem>>, vector<128x512xf32>
    %cst = arith.constant dense<0.000000e+00> : vector<1x512xf32>
    %5 = tpu.matmul %1, %4, %cst {dimension_numbers = #tpu.dot_dimension_numbers<[1], [0], [0], [1], [0, 0, 1, 1], [], []>} : vector<1x128xf32>, vector<128x512xf32>, vector<1x512xf32> -> vector<1x512xf32>
    %6 = arith.addf %5, %3 : vector<1x512xf32>
    %cst_7 = arith.constant 0.000000e+00 : f32
    %7 = vector.broadcast %cst_7 : f32 to vector<1x512xf32>
    %8 = arith.maximumf %6, %7 : vector<1x512xf32>
    %c0_8 = arith.constant 0 : index
    %c0_9 = arith.constant 0 : index
    %9 = vector.load %arg5[%c0_8, %c0_9] : memref<512x512xf32, #tpu.memory_space<vmem>>, vector<512x512xf32>
    %cst_10 = arith.constant dense<0.000000e+00> : vector<1x512xf32>
    %10 = tpu.matmul %8, %9, %cst_10 {dimension_numbers = #tpu.dot_dimension_numbers<[1], [0], [0], [1], [0, 0, 1, 1], [], []>} : vector<1x512xf32>, vector<512x512xf32>, vector<1x512xf32> -> vector<1x512xf32>
    %c0_11 = arith.constant 0 : index
    %c0_12 = arith.constant 0 : index
    %11 = vector.load %arg6[%c0_11, %c0_12] : memref<1x512xf32, #tpu.memory_space<vmem>>, vector<1x512xf32>
    %12 = arith.addf %10, %11 : vector<1x512xf32>
    %cst_13 = arith.constant 0.000000e+00 : f32
    %13 = vector.broadcast %cst_13 : f32 to vector<1x512xf32>
    %14 = arith.maximumf %12, %13 : vector<1x512xf32>
    %c0_14 = arith.constant 0 : index
    %c0_15 = arith.constant 0 : index
    %15 = vector.load %arg7[%c0_14, %c0_15] : memref<512x512xf32, #tpu.memory_space<vmem>>, vector<512x512xf32>
    %cst_16 = arith.constant dense<0.000000e+00> : vector<1x512xf32>
    %16 = tpu.matmul %14, %15, %cst_16 {dimension_numbers = #tpu.dot_dimension_numbers<[1], [0], [0], [1], [0, 0, 1, 1], [], []>} : vector<1x512xf32>, vector<512x512xf32>, vector<1x512xf32> -> vector<1x512xf32>
    %c0_17 = arith.constant 0 : index
    %c0_18 = arith.constant 0 : index
    %17 = vector.load %arg8[%c0_17, %c0_18] : memref<1x512xf32, #tpu.memory_space<vmem>>, vector<1x512xf32>
    %18 = arith.addf %16, %17 : vector<1x512xf32>
    %cst_19 = arith.constant 0.000000e+00 : f32
    %19 = vector.broadcast %cst_19 : f32 to vector<1x512xf32>
    %20 = arith.maximumf %18, %19 : vector<1x512xf32>
    %c0_20 = arith.constant 0 : index
    %c0_21 = arith.constant 0 : index
    %21 = vector.load %arg9[%c0_20, %c0_21] : memref<512x64xf32, #tpu.memory_space<vmem>>, vector<512x64xf32>
    %cst_22 = arith.constant dense<0.000000e+00> : vector<1x64xf32>
    %22 = tpu.matmul %20, %21, %cst_22 {dimension_numbers = #tpu.dot_dimension_numbers<[1], [0], [0], [1], [0, 0, 1, 1], [], []>} : vector<1x512xf32>, vector<512x64xf32>, vector<1x64xf32> -> vector<1x64xf32>
    %c0_23 = arith.constant 0 : index
    %c0_24 = arith.constant 0 : index
    %23 = vector.load %arg10[%c0_23, %c0_24] : memref<1x64xf32, #tpu.memory_space<vmem>>, vector<1x64xf32>
    %24 = arith.addf %22, %23 : vector<1x64xf32>
    %c0_25 = arith.constant 0 : index
    %c0_26 = arith.constant 0 : index
    %c0_27 = arith.constant 0 : index
    %25 = vector.load %arg13[%c0_25, %c0_26, %c0_27] : memref<1x1x64xf32, #tpu.memory_space<vmem>>, vector<1x1x64xf32>
    %26 = vector.shape_cast %25 : vector<1x1x64xf32> to vector<1x64xf32>
    %27 = vector.shape_cast %24 : vector<1x64xf32> to vector<1x1x64xf32>
    tpu.vector_store %arg13[%c0_25, %c0_26, %c0_27], %27 {strides = array<i32>} : memref<1x1x64xf32, #tpu.memory_space<vmem>>, vector<1x1x64xf32>,
    %c0_28 = arith.constant 0 : index
    %c0_29 = arith.constant 0 : index
    %28 = vector.load %arg11[%c0_28, %c0_29] : memref<512x64xf32, #tpu.memory_space<vmem>>, vector<512x64xf32>
    %cst_30 = arith.constant dense<0.000000e+00> : vector<1x64xf32>
    %29 = tpu.matmul %20, %28, %cst_30 {dimension_numbers = #tpu.dot_dimension_numbers<[1], [0], [0], [1], [0, 0, 1, 1], [], []>} : vector<1x512xf32>, vector<512x64xf32>, vector<1x64xf32> -> vector<1x64xf32>
    %c0_31 = arith.constant 0 : index
    %c0_32 = arith.constant 0 : index
    %30 = vector.load %arg12[%c0_31, %c0_32] : memref<1x64xf32, #tpu.memory_space<vmem>>, vector<1x64xf32>
    %31 = arith.addf %29, %30 : vector<1x64xf32>
    %cst_33 = arith.constant 0.000000e+00 : f32
    %32 = vector.broadcast %cst_33 : f32 to vector<1x64xf32>
    %33 = arith.maximumf %31, %32 : vector<1x64xf32>
    %34 = math.absf %31 : vector<1x64xf32>
    %cst_34 = arith.constant 0.000000e+00 : f32
    %35 = vector.broadcast %cst_34 : f32 to vector<1x64xf32>
    %36 = arith.subf %35, %34 : vector<1x64xf32>
    %37 = math.exp %36 : vector<1x64xf32>
    %38 = math.log1p %37 : vector<1x64xf32>
    %39 = arith.addf %33, %38 : vector<1x64xf32>
    %cst_35 = arith.constant 0.899999976 : f32
    %40 = vector.broadcast %cst_35 : f32 to vector<1x64xf32>
    %41 = arith.mulf %40, %39 : vector<1x64xf32>
    %cst_36 = arith.constant 1.000000e-01 : f32
    %42 = vector.broadcast %cst_36 : f32 to vector<1x64xf32>
    %43 = arith.addf %42, %41 : vector<1x64xf32>
    %c0_37 = arith.constant 0 : index
    %c0_38 = arith.constant 0 : index
    %c0_39 = arith.constant 0 : index
    %44 = vector.load %arg14[%c0_37, %c0_38, %c0_39] : memref<1x1x64xf32, #tpu.memory_space<vmem>>, vector<1x1x64xf32>
    %45 = vector.shape_cast %44 : vector<1x1x64xf32> to vector<1x64xf32>
    %46 = vector.shape_cast %43 : vector<1x64xf32> to vector<1x1x64xf32>
    tpu.vector_store %arg14[%c0_37, %c0_38, %c0_39], %46 {strides = array<i32>} : memref<1x1x64xf32, #tpu.memory_space<vmem>>, vector<1x1x64xf32>,
    return
  }
  func.func @transform_0(%arg0: i32, %arg1: i32) -> (i32, i32, i32) {
    %c0_i32 = arith.constant 0 : i32
    %c0_i32_0 = arith.constant 0 : i32
    return %arg0, %arg1, %c0_i32 : i32, i32, i32
  }
  func.func @transform_1(%arg0: i32, %arg1: i32) -> (i32, i32, i32) {
    %c0_i32 = arith.constant 0 : i32
    %c0_i32_0 = arith.constant 0 : i32
    %c0_i32_1 = arith.constant 0 : i32
    return %arg0, %c0_i32, %c0_i32_0 : i32, i32, i32
  }
  func.func @transform_2(%arg0: i32, %arg1: i32) -> (i32, i32) {
    %c0_i32 = arith.constant 0 : i32
    %c0_i32_0 = arith.constant 0 : i32
    %c0_i32_1 = arith.constant 0 : i32
    return %c0_i32, %c0_i32_0 : i32, i32
  }
  func.func @transform_3(%arg0: i32, %arg1: i32) -> (i32, i32) {
    %c0_i32 = arith.constant 0 : i32
    %c0_i32_0 = arith.constant 0 : i32
    %c0_i32_1 = arith.constant 0 : i32
    return %c0_i32, %c0_i32_0 : i32, i32
  }
  func.func @transform_4(%arg0: i32, %arg1: i32) -> (i32, i32) {
    %c0_i32 = arith.constant 0 : i32
    %c0_i32_0 = arith.constant 0 : i32
    %c0_i32_1 = arith.constant 0 : i32
    return %c0_i32, %c0_i32_0 : i32, i32
  }
  func.func @transform_5(%arg0: i32, %arg1: i32) -> (i32, i32) {
    %c0_i32 = arith.constant 0 : i32
    %c0_i32_0 = arith.constant 0 : i32
    %c0_i32_1 = arith.constant 0 : i32
    return %c0_i32, %c0_i32_0 : i32, i32
  }
  func.func @transform_6(%arg0: i32, %arg1: i32) -> (i32, i32) {
    %c0_i32 = arith.constant 0 : i32
    %c0_i32_0 = arith.constant 0 : i32
    %c0_i32_1 = arith.constant 0 : i32
    return %c0_i32, %c0_i32_0 : i32, i32
  }
  func.func @transform_7(%arg0: i32, %arg1: i32) -> (i32, i32) {
    %c0_i32 = arith.constant 0 : i32
    %c0_i32_0 = arith.constant 0 : i32
    %c0_i32_1 = arith.constant 0 : i32
    return %c0_i32, %c0_i32_0 : i32, i32
  }
  func.func @transform_8(%arg0: i32, %arg1: i32) -> (i32, i32) {
    %c0_i32 = arith.constant 0 : i32
    %c0_i32_0 = arith.constant 0 : i32
    %c0_i32_1 = arith.constant 0 : i32
    return %c0_i32, %c0_i32_0 : i32, i32
  }
  func.func @transform_9(%arg0: i32, %arg1: i32) -> (i32, i32) {
    %c0_i32 = arith.constant 0 : i32
    %c0_i32_0 = arith.constant 0 : i32
    %c0_i32_1 = arith.constant 0 : i32
    return %c0_i32, %c0_i32_0 : i32, i32
  }
  func.func @transform_10(%arg0: i32, %arg1: i32) -> (i32, i32) {
    %c0_i32 = arith.constant 0 : i32
    %c0_i32_0 = arith.constant 0 : i32
    %c0_i32_1 = arith.constant 0 : i32
    return %c0_i32, %c0_i32_0 : i32, i32
  }
  func.func @transform_11(%arg0: i32, %arg1: i32) -> (i32, i32, i32) {
    %c0_i32 = arith.constant 0 : i32
    %c0_i32_0 = arith.constant 0 : i32
    return %arg0, %arg1, %c0_i32 : i32, i32, i32
  }
  func.func @transform_12(%arg0: i32, %arg1: i32) -> (i32, i32, i32) {
    %c0_i32 = arith.constant 0 : i32
    %c0_i32_0 = arith.constant 0 : i32
    return %arg0, %arg1, %c0_i32 : i32, i32, i32
  }
}

</mosaic_0001>

<bundles_post_ra>
// kernel: decoder_forward.1
= control target key start
LH: loop header
LB: loop body
LE: loop exit
PB: predicated region body
PF: predicated region fallthrough
CT: control target
= control target key end

     0   :  { %s2355_s21 = smov 0   ;;  %s2357_s22 = smov 0   ;;  %s4592_s0 = inlined_call_operand.vmem [shape: f32[2,1,128], index: 0, kind: input, shape index: {}]   ;;  %s4593_s1 = inlined_call_operand.vmem [shape: f32[2,1,512], index: 1, kind: input, shape index: {}]   ;;  %s4594_s2 = inlined_call_operand.vmem [shape: f32[128,512], index: 2, kind: input, shape index: {}]   ;;  %s4595_s3 = inlined_call_operand.vmem [shape: f32[512,512], index: 3, kind: input, shape index: {}]   ;;  %s4596_s4 = inlined_call_operand.vmem [shape: f32[1,512], index: 4, kind: input, shape index: {}]   ;;  %s4597_s5 = inlined_call_operand.vmem [shape: f32[512,512], index: 5, kind: input, shape index: {}]   ;;  %s4598_s6 = inlined_call_operand.vmem [shape: f32[1,512], index: 6, kind: input, shape index: {}]   ;;  %s4599_s7 = inlined_call_operand.vmem [shape: f32[512,64], index: 7, kind: input, shape index: {}]   ;;  %s4600_s8 = inlined_call_operand.vmem [shape: f32[1,64], index: 8, kind: input, shape index: {}]   ;;  %s4601_s9 = inlined_call_operand.vmem [shape: f32[512,64], index: 9, kind: input, shape index: {}]   ;;  %s4602_s10 = inlined_call_operand.vmem [shape: f32[1,64], index: 10, kind: input, shape index: {}]   ;;  %s4603_s11 = inlined_call_operand.vmem [shape: f32[2,1,64], index: 11, kind: output, shape index: {0}]   ;;  %s4604_s12 = inlined_call_operand.vmem [shape: f32[2,1,64], index: 12, kind: output, shape index: {1}]  }
   0x1   :  { %s2359_s23 = smov 0  }
   0x2 LB: > { %s35_s24 = sadd.s32 1, %s2284_s22  ;;  %p2234_p0 = scmp.ge.s32.totalorder %s2288_s23, 1  ;;  %s2288_s23 = sphi %s2359_s23, %s23_s23   ;;  %s2284_s22 = sphi %s2357_s22, %s4606_s22   ;;  %s2280_s21 = sphi %s2355_s21, %s4605_s21  }
   0x3   : > { %p37_p1 = scmp.ge.s32.totalorder %s35_s24, 2  ;;  %p393_p2 = scmp.lt.s32.totalorder %s2288_s23, 3 }
   0x5   : > { %s4608_s24 = smov (%p37_p1, %s35_s24), 0  ;;  %p394_p3 = pnand %p2234_p0, %p393_p2 }
   0x6   : > { %p447_p4 = scmp.lt.s32.totalorder (!%p394_p3), %s2280_s21, 1 }
   0x7   : > { %397 = sbr.rel (%p394_p3) target bundleno = 763 (0x2fb), region = 64 }
   0xc   : > { %v531_v0 = vld [vmem:[%s4594_s2 + $0x1e0] sm:$0xff]  ;;  %v532_v1 = vld [vmem:[%s4594_s2 + $0x1e8] sm:$0xff]  ;;  %v533_v2 = vld [vmem:[%s4594_s2 + $0x1f0] sm:$0xff]  ;;  %s4610_s21 = smov (!%p447_p4, %s2280_s21), 1  ;;  %vm1953_vm0 = vcmask 516096  }
   0xd   : > { %544 = vmatpush.msra.mxu0 %v531_v0  ;;  %564 = vmatpush.msra.mxu1 %v532_v1  ;;  %v534_v3 = vld [vmem:[%s4594_s2 + $0x1f8] sm:$0xff]  ;;  %v527_v4 = vld [vmem:[%s4594_s2 + $0x1c0] sm:$0xff]  ;;  %v528_v5 = vld [vmem:[%s4594_s2 + $0x1c8] sm:$0xff]  ;;  %s452_s17 = scalar_lea.vmem %s4592_s0, %s4610_s21  ;;  %s2235_s16 = sshll.u32 %s4610_s21, 2 }
   0xe   : > { %584 = vmatpush.msra.mxu2 %v533_v2  ;;  %604 = vmatpush.msra.mxu3 %v534_v3  ;;  %v529_v6 = vld [vmem:[%s4594_s2 + $0x1d0] sm:$0xff]  ;;  %v530_v7 = vld [vmem:[%s4594_s2 + $0x1d8] sm:$0xff]  ;;  %v523_v8 = vld [vmem:[%s4594_s2 + $0x1a0] sm:$0xff]  ;;  %s462_s19 = scalar_lea.vmem %s4603_s11, %s4610_s21  ;;  %s468_s25 = scalar_lea.vmem %s4604_s12, %s4610_s21 }
   0xf   : > { %545 = vmatpush.msra.mxu0 %v527_v4  ;;  %565 = vmatpush.msra.mxu1 %v528_v5  ;;  %v524_v9 = vld [vmem:[%s4594_s2 + $0x1a8] sm:$0xff]  ;;  %v525_v10 = vld [vmem:[%s4594_s2 + $0x1b0] sm:$0xff]  ;;  %v526_v11 = vld [vmem:[%s4594_s2 + $0x1b8] sm:$0xff] }
  0x10   : > { %585 = vmatpush.msra.mxu2 %v529_v6  ;;  %605 = vmatpush.msra.mxu3 %v530_v7  ;;  %v519_v12 = vld [vmem:[%s4594_s2 + $0x180] sm:$0xff]  ;;  %v520_v13 = vld [vmem:[%s4594_s2 + $0x188] sm:$0xff]  ;;  %v521_v14 = vld [vmem:[%s4594_s2 + $0x190] sm:$0xff] }
  0x11   : > { %546 = vmatpush.msra.mxu0 %v523_v8  ;;  %566 = vmatpush.msra.mxu1 %v524_v9  ;;  %v522_v15 = vld [vmem:[%s4594_s2 + $0x198] sm:$0xff]  ;;  %v515_v16 = vld [vmem:[%s4594_s2 + $0x160] sm:$0xff]  ;;  %v516_v17 = vld [vmem:[%s4594_s2 + $0x168] sm:$0xff] }
  0x12   : > { %586 = vmatpush.msra.mxu2 %v525_v10  ;;  %606 = vmatpush.msra.mxu3 %v526_v11  ;;  %v517_v18 = vld [vmem:[%s4594_s2 + $0x170] sm:$0xff]  ;;  %v518_v19 = vld [vmem:[%s4594_s2 + $0x178] sm:$0xff]  ;;  %v511_v20 = vld [vmem:[%s4594_s2 + $0x140] sm:$0xff] }
  0x13   : > { %547 = vmatpush.msra.mxu0 %v519_v12  ;;  %567 = vmatpush.msra.mxu1 %v520_v13  ;;  %v512_v21 = vld [vmem:[%s4594_s2 + $0x148] sm:$0xff]  ;;  %v513_v22 = vld [vmem:[%s4594_s2 + $0x150] sm:$0xff]  ;;  %v514_v23 = vld [vmem:[%s4594_s2 + $0x158] sm:$0xff] }
  0x14   : > { %587 = vmatpush.msra.mxu2 %v521_v14  ;;  %607 = vmatpush.msra.mxu3 %v522_v15  ;;  %v507_v24 = vld [vmem:[%s4594_s2 + $0x120] sm:$0xff]  ;;  %v508_v25 = vld [vmem:[%s4594_s2 + $0x128] sm:$0xff]  ;;  %v509_v26 = vld [vmem:[%s4594_s2 + $0x130] sm:$0xff] }
  0x15   : > { %548 = vmatpush.msra.mxu0 %v515_v16  ;;  %568 = vmatpush.msra.mxu1 %v516_v17  ;;  %v510_v27 = vld [vmem:[%s4594_s2 + $0x138] sm:$0xff]  ;;  %v503_v28 = vld [vmem:[%s4594_s2 + $0x100] sm:$0xff]  ;;  %v504_v29 = vld [vmem:[%s4594_s2 + $0x108] sm:$0xff] }
  0x16   : > { %588 = vmatpush.msra.mxu2 %v517_v18  ;;  %608 = vmatpush.msra.mxu3 %v518_v19  ;;  %v505_v30 = vld [vmem:[%s4594_s2 + $0x110] sm:$0xff]  ;;  %v506_v31 = vld [vmem:[%s4594_s2 + $0x118] sm:$0xff]  ;;  %v499_v32 = vld [vmem:[%s4594_s2 + $0xe0] sm:$0xff] }
  0x17   : > { %549 = vmatpush.msra.mxu0 %v511_v20  ;;  %569 = vmatpush.msra.mxu1 %v512_v21  ;;  %v500_v33 = vld [vmem:[%s4594_s2 + $0xe8] sm:$0xff]  ;;  %v501_v34 = vld [vmem:[%s4594_s2 + $0xf0] sm:$0xff]  ;;  %v502_v35 = vld [vmem:[%s4594_s2 + $0xf8] sm:$0xff] }
  0x18   : > { %589 = vmatpush.msra.mxu2 %v513_v22  ;;  %609 = vmatpush.msra.mxu3 %v514_v23  ;;  %v495_v36 = vld [vmem:[%s4594_s2 + $0xc0] sm:$0xff]  ;;  %v496_v37 = vld [vmem:[%s4594_s2 + $0xc8] sm:$0xff]  ;;  %v497_v38 = vld [vmem:[%s4594_s2 + $0xd0] sm:$0xff] }
  0x19   : > { %550 = vmatpush.msra.mxu0 %v507_v24  ;;  %570 = vmatpush.msra.mxu1 %v508_v25  ;;  %v498_v39 = vld [vmem:[%s4594_s2 + $0xd8] sm:$0xff]  ;;  %v491_v40 = vld [vmem:[%s4594_s2 + $0xa0] sm:$0xff]  ;;  %v492_v41 = vld [vmem:[%s4594_s2 + $0xa8] sm:$0xff] }
  0x1a   : > { %590 = vmatpush.msra.mxu2 %v509_v26  ;;  %610 = vmatpush.msra.mxu3 %v510_v27  ;;  %v493_v42 = vld [vmem:[%s4594_s2 + $0xb0] sm:$0xff]  ;;  %v494_v43 = vld [vmem:[%s4594_s2 + $0xb8] sm:$0xff]  ;;  %v487_v44 = vld [vmem:[%s4594_s2 + $0x80] sm:$0xff] }
  0x1b   : > { %551 = vmatpush.msra.mxu0 %v503_v28  ;;  %571 = vmatpush.msra.mxu1 %v504_v29  ;;  %v488_v45 = vld [vmem:[%s4594_s2 + $0x88] sm:$0xff]  ;;  %v489_v46 = vld [vmem:[%s4594_s2 + $0x90] sm:$0xff]  ;;  %v490_v47 = vld [vmem:[%s4594_s2 + $0x98] sm:$0xff] }
  0x1c   : > { %591 = vmatpush.msra.mxu2 %v505_v30  ;;  %611 = vmatpush.msra.mxu3 %v506_v31  ;;  %v483_v48 = vld [vmem:[%s4594_s2 + $0x60] sm:$0xff]  ;;  %v484_v49 = vld [vmem:[%s4594_s2 + $0x68] sm:$0xff]  ;;  %v485_v50 = vld [vmem:[%s4594_s2 + $0x70] sm:$0xff] }
  0x1d   : > { %552 = vmatpush.msra.mxu0 %v499_v32  ;;  %572 = vmatpush.msra.mxu1 %v500_v33  ;;  %v486_v51 = vld [vmem:[%s4594_s2 + $0x78] sm:$0xff]  ;;  %v479_v52 = vld [vmem:[%s4594_s2 + $0x40] sm:$0xff]  ;;  %v480_v53 = vld [vmem:[%s4594_s2 + $0x48] sm:$0xff] }
  0x1e   : > { %592 = vmatpush.msra.mxu2 %v501_v34  ;;  %612 = vmatpush.msra.mxu3 %v502_v35  ;;  %v481_v54 = vld [vmem:[%s4594_s2 + $0x50] sm:$0xff]  ;;  %v482_v55 = vld [vmem:[%s4594_s2 + $0x58] sm:$0xff]  ;;  %v475_v56 = vld [vmem:[%s4594_s2 + $0x20] sm:$0xff] }
  0x1f   : > { %553 = vmatpush.msra.mxu0 %v495_v36  ;;  %573 = vmatpush.msra.mxu1 %v496_v37  ;;  %v476_v57 = vld [vmem:[%s4594_s2 + $0x28] sm:$0xff]  ;;  %v477_v58 = vld [vmem:[%s4594_s2 + $0x30] sm:$0xff]  ;;  %v478_v59 = vld [vmem:[%s4594_s2 + $0x38] sm:$0xff] }
  0x20   : > { %593 = vmatpush.msra.mxu2 %v497_v38  ;;  %613 = vmatpush.msra.mxu3 %v498_v39  ;;  %v471_v60 = vld [vmem:[%s4594_s2] sm:$0xff]  ;;  %v472_v61 = vld [vmem:[%s4594_s2 + $0x8] sm:$0xff]  ;;  %v473_v62 = vld [vmem:[%s4594_s2 + $0x10] sm:$0xff] }
  0x21   : > { %554 = vmatpush.msra.mxu0 %v491_v40  ;;  %574 = vmatpush.msra.mxu1 %v492_v41  ;;  %v474_v63 = vld [vmem:[%s4594_s2 + $0x18] sm:$0xff]  ;;  %v469_v0 = vld [vmem:[%s452_s17] sm:$0x1]  ;;  %s456_s17 = scalar_lea.vmem %s4593_s1, %s2235_s16 }
  0x22   : > { %594 = vmatpush.msra.mxu2 %v493_v42  ;;  %614 = vmatpush.msra.mxu3 %v494_v43  ;;  %v688_v1 = vld [vmem:[%s4595_s3 + $0x1e0] sm:$0xff] }
  0x23   : > { %555 = vmatpush.msra.mxu0 %v487_v44  ;;  %575 = vmatpush.msra.mxu1 %v488_v45  ;;  %v752_v2 = vld [vmem:[%s4595_s3 + $0x3e0] sm:$0xff] }
  0x24   : > { %595 = vmatpush.msra.mxu2 %v489_v46  ;;  %615 = vmatpush.msra.mxu3 %v490_v47  ;;  %v816_v3 = vld [vmem:[%s4595_s3 + $0x5e0] sm:$0xff] }
  0x25   : > { %556 = vmatpush.msra.mxu0 %v483_v48  ;;  %576 = vmatpush.msra.mxu1 %v484_v49  ;;  %v880_v4 = vld [vmem:[%s4595_s3 + $0x7e0] sm:$0xff] }
  0x26   : > { %596 = vmatpush.msra.mxu2 %v485_v50  ;;  %616 = vmatpush.msra.mxu3 %v486_v51  ;;  %v684_v5 = vld [vmem:[%s4595_s3 + $0x1c0] sm:$0xff] }
  0x27   : > { %557 = vmatpush.msra.mxu0 %v479_v52  ;;  %577 = vmatpush.msra.mxu1 %v480_v53  ;;  %v748_v6 = vld [vmem:[%s4595_s3 + $0x3c0] sm:$0xff] }
  0x28   : > { %597 = vmatpush.msra.mxu2 %v481_v54  ;;  %617 = vmatpush.msra.mxu3 %v482_v55  ;;  %v812_v7 = vld [vmem:[%s4595_s3 + $0x5c0] sm:$0xff] }
  0x29   : > { %558 = vmatpush.msra.mxu0 %v475_v56  ;;  %578 = vmatpush.msra.mxu1 %v476_v57  ;;  %v876_v8 = vld [vmem:[%s4595_s3 + $0x7c0] sm:$0xff] }
  0x2a   : > { %598 = vmatpush.msra.mxu2 %v477_v58  ;;  %618 = vmatpush.msra.mxu3 %v478_v59  ;;  %v680_v9 = vld [vmem:[%s4595_s3 + $0x1a0] sm:$0xff] }
  0x2b   : > { %559 = vmatpush.msra.mxu0 %v471_v60  ;;  %579 = vmatpush.msra.mxu1 %v472_v61  ;;  %v744_v10 = vld [vmem:[%s4595_s3 + $0x3a0] sm:$0xff] }
  0x2c   : > { %599 = vmatpush.msra.mxu2 %v473_v62  ;;  %619 = vmatpush.msra.mxu3 %v474_v63  ;;  %v808_v11 = vld [vmem:[%s4595_s3 + $0x5a0] sm:$0xff]  ;;  %v689_v63 = vld [vmem:[%s4595_s3 + $0x1e8] sm:$0xff] }
  0x2d   : > { %560 = vmatmul.f32.vlgmr.msra.gmra.mxu0 %v469_v0  ;;  %580 = vmatmul.f32.vlgmr.msra.gmra.mxu1 %v469_v0  ;;  %v872_v12 = vld [vmem:[%s4595_s3 + $0x7a0] sm:$0xff] }
  0x2e   : > { %600 = vmatmul.f32.vlgmr.msra.gmra.mxu2 %v469_v0  ;;  %620 = vmatmul.f32.vlgmr.msra.gmra.mxu3 %v469_v0  ;;  %v676_v13 = vld [vmem:[%s4595_s3 + $0x180] sm:$0xff]  ;;  %v753_v0 = vld [vmem:[%s4595_s3 + $0x3e8] sm:$0xff] }
  0x2f   : > { %894 = vmatpush.msrb.mxu0 %v688_v1  ;;  %914 = vmatpush.msrb.mxu1 %v752_v2  ;;  %v740_v14 = vld [vmem:[%s4595_s3 + $0x380] sm:$0xff] }
  0x30   : > { %934 = vmatpush.msrb.mxu2 %v816_v3  ;;  %954 = vmatpush.msrb.mxu3 %v880_v4  ;;  %v804_v15 = vld [vmem:[%s4595_s3 + $0x580] sm:$0xff]  ;;  %v685_v3 = vld [vmem:[%s4595_s3 + $0x1c8] sm:$0xff] }
  0x31   : > { %895 = vmatpush.msrb.mxu0 %v684_v5  ;;  %915 = vmatpush.msrb.mxu1 %v748_v6  ;;  %v868_v16 = vld [vmem:[%s4595_s3 + $0x780] sm:$0xff]  ;;  %v749_v4 = vld [vmem:[%s4595_s3 + $0x3c8] sm:$0xff] }
  0x32   : > { %935 = vmatpush.msrb.mxu2 %v812_v7  ;;  %955 = vmatpush.msrb.mxu3 %v876_v8  ;;  %v672_v17 = vld [vmem:[%s4595_s3 + $0x160] sm:$0xff]  ;;  %v817_v5 = vld [vmem:[%s4595_s3 + $0x5e8] sm:$0xff] }
  0x33   : > { %896 = vmatpush.msrb.mxu0 %v680_v9  ;;  %916 = vmatpush.msrb.mxu1 %v744_v10  ;;  %v736_v18 = vld [vmem:[%s4595_s3 + $0x360] sm:$0xff]  ;;  %v881_v6 = vld [vmem:[%s4595_s3 + $0x7e8] sm:$0xff] }
  0x34   : > { %936 = vmatpush.msrb.mxu2 %v808_v11  ;;  %956 = vmatpush.msrb.mxu3 %v872_v12  ;;  %v800_v19 = vld [vmem:[%s4595_s3 + $0x560] sm:$0xff]  ;;  %v681_v7 = vld [vmem:[%s4595_s3 + $0x1a8] sm:$0xff] }
  0x35   : > { %897 = vmatpush.msrb.mxu0 %v676_v13  ;;  %917 = vmatpush.msrb.mxu1 %v740_v14  ;;  %v864_v20 = vld [vmem:[%s4595_s3 + $0x760] sm:$0xff]  ;;  %v745_v8 = vld [vmem:[%s4595_s3 + $0x3a8] sm:$0xff] }
  0x36   : > { %v668_v21 = vld [vmem:[%s4595_s3 + $0x140] sm:$0xff]  ;;  %937 = vmatpush.msrb.mxu2 %v804_v15  ;;  %957 = vmatpush.msrb.mxu3 %v868_v16  ;;  %v813_v9 = vld [vmem:[%s4595_s3 + $0x5c8] sm:$0xff] }
  0x37   : > { %v732_v22 = vld [vmem:[%s4595_s3 + $0x340] sm:$0xff]  ;;  %898 = vmatpush.msrb.mxu0 %v672_v17  ;;  %918 = vmatpush.msrb.mxu1 %v736_v18  ;;  %v877_v10 = vld [vmem:[%s4595_s3 + $0x7c8] sm:$0xff] }
  0x38   : > { %v796_v23 = vld [vmem:[%s4595_s3 + $0x540] sm:$0xff]  ;;  %938 = vmatpush.msrb.mxu2 %v800_v19  ;;  %958 = vmatpush.msrb.mxu3 %v864_v20  ;;  %v677_v11 = vld [vmem:[%s4595_s3 + $0x188] sm:$0xff] }
  0x39   : > { %v860_v24 = vld [vmem:[%s4595_s3 + $0x740] sm:$0xff]  ;;  %899 = vmatpush.msrb.mxu0 %v668_v21  ;;  %919 = vmatpush.msrb.mxu1 %v732_v22  ;;  %v741_v12 = vld [vmem:[%s4595_s3 + $0x388] sm:$0xff] }
  0x3a   : > { %v664_v25 = vld [vmem:[%s4595_s3 + $0x120] sm:$0xff]  ;;  %939 = vmatpush.msrb.mxu2 %v796_v23  ;;  %959 = vmatpush.msrb.mxu3 %v860_v24  ;;  %v809_v13 = vld [vmem:[%s4595_s3 + $0x5a8] sm:$0xff] }
  0x3b   : > { %v728_v26 = vld [vmem:[%s4595_s3 + $0x320] sm:$0xff]  ;;  %900 = vmatpush.msrb.mxu0 %v664_v25  ;;  %v873_v14 = vld [vmem:[%s4595_s3 + $0x7a8] sm:$0xff] }
  0x3c   : > { %v792_v27 = vld [vmem:[%s4595_s3 + $0x520] sm:$0xff]  ;;  %920 = vmatpush.msrb.mxu1 %v728_v26  ;;  %v673_v15 = vld [vmem:[%s4595_s3 + $0x168] sm:$0xff] }
  0x3d   : > { %v856_v28 = vld [vmem:[%s4595_s3 + $0x720] sm:$0xff]  ;;  %940 = vmatpush.msrb.mxu2 %v792_v27  ;;  %v737_v16 = vld [vmem:[%s4595_s3 + $0x368] sm:$0xff] }
  0x3e   : > { %v660_v29 = vld [vmem:[%s4595_s3 + $0x100] sm:$0xff]  ;;  %960 = vmatpush.msrb.mxu3 %v856_v28  ;;  %v805_v17 = vld [vmem:[%s4595_s3 + $0x588] sm:$0xff] }
  0x3f   : > { %v724_v30 = vld [vmem:[%s4595_s3 + $0x300] sm:$0xff]  ;;  %901 = vmatpush.msrb.mxu0 %v660_v29  ;;  %v869_v18 = vld [vmem:[%s4595_s3 + $0x788] sm:$0xff] }
  0x40   : > { %v788_v31 = vld [vmem:[%s4595_s3 + $0x500] sm:$0xff]  ;;  %921 = vmatpush.msrb.mxu1 %v724_v30  ;;  %v669_v19 = vld [vmem:[%s4595_s3 + $0x148] sm:$0xff] }
  0x41   : > { %v852_v32 = vld [vmem:[%s4595_s3 + $0x700] sm:$0xff]  ;;  %941 = vmatpush.msrb.mxu2 %v788_v31  ;;  %v733_v20 = vld [vmem:[%s4595_s3 + $0x348] sm:$0xff] }
  0x42   : > { %v656_v33 = vld [vmem:[%s4595_s3 + $0xe0] sm:$0xff]  ;;  %961 = vmatpush.msrb.mxu3 %v852_v32  ;;  %v801_v21 = vld [vmem:[%s4595_s3 + $0x568] sm:$0xff] }
  0x43   : > { %v720_v34 = vld [vmem:[%s4595_s3 + $0x2e0] sm:$0xff]  ;;  %902 = vmatpush.msrb.mxu0 %v656_v33  ;;  %v865_v22 = vld [vmem:[%s4595_s3 + $0x768] sm:$0xff] }
  0x44   : > { %v784_v35 = vld [vmem:[%s4595_s3 + $0x4e0] sm:$0xff]  ;;  %922 = vmatpush.msrb.mxu1 %v720_v34  ;;  %v665_v23 = vld [vmem:[%s4595_s3 + $0x128] sm:$0xff] }
  0x45   : > { %v848_v36 = vld [vmem:[%s4595_s3 + $0x6e0] sm:$0xff]  ;;  %942 = vmatpush.msrb.mxu2 %v784_v35  ;;  %v729_v24 = vld [vmem:[%s4595_s3 + $0x328] sm:$0xff] }
  0x46   : > { %v652_v37 = vld [vmem:[%s4595_s3 + $0xc0] sm:$0xff]  ;;  %962 = vmatpush.msrb.mxu3 %v848_v36  ;;  %v797_v25 = vld [vmem:[%s4595_s3 + $0x548] sm:$0xff] }
  0x47   : > { %v716_v38 = vld [vmem:[%s4595_s3 + $0x2c0] sm:$0xff]  ;;  %903 = vmatpush.msrb.mxu0 %v652_v37  ;;  %v861_v26 = vld [vmem:[%s4595_s3 + $0x748] sm:$0xff] }
  0x48   : > { %v780_v39 = vld [vmem:[%s4595_s3 + $0x4c0] sm:$0xff]  ;;  %923 = vmatpush.msrb.mxu1 %v716_v38  ;;  %v661_v27 = vld [vmem:[%s4595_s3 + $0x108] sm:$0xff] }
  0x49   : > { %v844_v40 = vld [vmem:[%s4595_s3 + $0x6c0] sm:$0xff]  ;;  %943 = vmatpush.msrb.mxu2 %v780_v39  ;;  %v725_v28 = vld [vmem:[%s4595_s3 + $0x308] sm:$0xff] }
  0x4a   : > { %v648_v41 = vld [vmem:[%s4595_s3 + $0xa0] sm:$0xff]  ;;  %963 = vmatpush.msrb.mxu3 %v844_v40  ;;  %v793_v29 = vld [vmem:[%s4595_s3 + $0x528] sm:$0xff] }
  0x4b   : > { %v712_v42 = vld [vmem:[%s4595_s3 + $0x2a0] sm:$0xff]  ;;  %904 = vmatpush.msrb.mxu0 %v648_v41  ;;  %v857_v30 = vld [vmem:[%s4595_s3 + $0x728] sm:$0xff] }
  0x4c   : > { %v776_v43 = vld [vmem:[%s4595_s3 + $0x4a0] sm:$0xff]  ;;  %924 = vmatpush.msrb.mxu1 %v712_v42  ;;  %v657_v31 = vld [vmem:[%s4595_s3 + $0xe8] sm:$0xff] }
  0x4d   : > { %v840_v44 = vld [vmem:[%s4595_s3 + $0x6a0] sm:$0xff]  ;;  %944 = vmatpush.msrb.mxu2 %v776_v43  ;;  %v721_v32 = vld [vmem:[%s4595_s3 + $0x2e8] sm:$0xff] }
  0x4e   : > { %v644_v45 = vld [vmem:[%s4595_s3 + $0x80] sm:$0xff]  ;;  %964 = vmatpush.msrb.mxu3 %v840_v44  ;;  %v789_v33 = vld [vmem:[%s4595_s3 + $0x508] sm:$0xff] }
  0x4f   : > { %v708_v46 = vld [vmem:[%s4595_s3 + $0x280] sm:$0xff]  ;;  %905 = vmatpush.msrb.mxu0 %v644_v45  ;;  %v853_v34 = vld [vmem:[%s4595_s3 + $0x708] sm:$0xff] }
  0x50   : > { %v772_v47 = vld [vmem:[%s4595_s3 + $0x480] sm:$0xff]  ;;  %925 = vmatpush.msrb.mxu1 %v708_v46  ;;  %v653_v35 = vld [vmem:[%s4595_s3 + $0xc8] sm:$0xff] }
  0x51   : > { %v836_v48 = vld [vmem:[%s4595_s3 + $0x680] sm:$0xff]  ;;  %945 = vmatpush.msrb.mxu2 %v772_v47  ;;  %v717_v36 = vld [vmem:[%s4595_s3 + $0x2c8] sm:$0xff] }
  0x52   : > { %v640_v49 = vld [vmem:[%s4595_s3 + $0x60] sm:$0xff]  ;;  %965 = vmatpush.msrb.mxu3 %v836_v48  ;;  %v785_v37 = vld [vmem:[%s4595_s3 + $0x4e8] sm:$0xff] }
  0x53   : > { %v704_v50 = vld [vmem:[%s4595_s3 + $0x260] sm:$0xff]  ;;  %906 = vmatpush.msrb.mxu0 %v640_v49  ;;  %v849_v38 = vld [vmem:[%s4595_s3 + $0x6e8] sm:$0xff] }
  0x54   : > { %v768_v51 = vld [vmem:[%s4595_s3 + $0x460] sm:$0xff]  ;;  %926 = vmatpush.msrb.mxu1 %v704_v50  ;;  %v649_v39 = vld [vmem:[%s4595_s3 + $0xa8] sm:$0xff] }
  0x55   : > { %v832_v52 = vld [vmem:[%s4595_s3 + $0x660] sm:$0xff]  ;;  %946 = vmatpush.msrb.mxu2 %v768_v51  ;;  %v713_v40 = vld [vmem:[%s4595_s3 + $0x2a8] sm:$0xff] }
  0x56   : > { %v636_v53 = vld [vmem:[%s4595_s3 + $0x40] sm:$0xff]  ;;  %966 = vmatpush.msrb.mxu3 %v832_v52  ;;  %v781_v41 = vld [vmem:[%s4595_s3 + $0x4c8] sm:$0xff] }
  0x57   : > { %v700_v54 = vld [vmem:[%s4595_s3 + $0x240] sm:$0xff]  ;;  %907 = vmatpush.msrb.mxu0 %v636_v53  ;;  %v845_v42 = vld [vmem:[%s4595_s3 + $0x6c8] sm:$0xff] }
  0x58   : > { %v764_v55 = vld [vmem:[%s4595_s3 + $0x440] sm:$0xff]  ;;  %927 = vmatpush.msrb.mxu1 %v700_v54  ;;  %v645_v43 = vld [vmem:[%s4595_s3 + $0x88] sm:$0xff] }
  0x59   : > { %v828_v56 = vld [vmem:[%s4595_s3 + $0x640] sm:$0xff]  ;;  %947 = vmatpush.msrb.mxu2 %v764_v55  ;;  %v709_v44 = vld [vmem:[%s4595_s3 + $0x288] sm:$0xff] }
  0x5a   : > { %v632_v57 = vld [vmem:[%s4595_s3 + $0x20] sm:$0xff]  ;;  %967 = vmatpush.msrb.mxu3 %v828_v56  ;;  %v641_v45 = vld [vmem:[%s4595_s3 + $0x68] sm:$0xff] }
  0x5b   : > { %v696_v58 = vld [vmem:[%s4595_s3 + $0x220] sm:$0xff]  ;;  %908 = vmatpush.msrb.mxu0 %v632_v57  ;;  %v705_v46 = vld [vmem:[%s4595_s3 + $0x268] sm:$0xff] }
  0x5c   : > { %v760_v59 = vld [vmem:[%s4595_s3 + $0x420] sm:$0xff]  ;;  %928 = vmatpush.msrb.mxu1 %v696_v58  ;;  %v637_v47 = vld [vmem:[%s4595_s3 + $0x48] sm:$0xff] }
  0x5d   : > { %v824_v60 = vld [vmem:[%s4595_s3 + $0x620] sm:$0xff]  ;;  %948 = vmatpush.msrb.mxu2 %v760_v59  ;;  %v701_v48 = vld [vmem:[%s4595_s3 + $0x248] sm:$0xff] }
  0x5e   : > { %v628_v61 = vld [vmem:[%s4595_s3] sm:$0xff]  ;;  %968 = vmatpush.msrb.mxu3 %v824_v60  ;;  %v777_v49 = vld [vmem:[%s4595_s3 + $0x4a8] sm:$0xff] }
  0x5f   : > { %v692_v62 = vld [vmem:[%s4595_s3 + $0x200] sm:$0xff]  ;;  %909 = vmatpush.msrb.mxu0 %v628_v61  ;;  %v841_v50 = vld [vmem:[%s4595_s3 + $0x6a8] sm:$0xff] }
  0x60   : > { %v756_v1 = vld [vmem:[%s4595_s3 + $0x400] sm:$0xff]  ;;  %929 = vmatpush.msrb.mxu1 %v692_v62  ;;  %v633_v51 = vld [vmem:[%s4595_s3 + $0x28] sm:$0xff] }
  0x61   : > { %v820_v2 = vld [vmem:[%s4595_s3 + $0x600] sm:$0xff]  ;;  %974 = vmatpush.msra.mxu0 %v689_v63  ;;  %949 = vmatpush.msrb.mxu2 %v756_v1  ;;  %v697_v52 = vld [vmem:[%s4595_s3 + $0x228] sm:$0xff] }
  0x62   : > { %994 = vmatpush.msra.mxu1 %v753_v0  ;;  %969 = vmatpush.msrb.mxu3 %v820_v2  ;;  %v773_v53 = vld [vmem:[%s4595_s3 + $0x488] sm:$0xff]  ;;  %v470_v1 = vld [vmem:[%s456_s17] sm:$0xf] }
  0x63   : > { %975 = vmatpush.msra.mxu0 %v685_v3  ;;  %1014 = vmatpush.msra.mxu2 %v817_v5  ;;  %v837_v54 = vld [vmem:[%s4595_s3 + $0x688] sm:$0xff]  ;;  %v536_v2 = vperm.slane %v470_v1, 0  ;;  %v537_v3 = vperm.slane %v470_v1, 1 }
  0x64   : > { %995 = vmatpush.msra.mxu1 %v749_v4  ;;  %1034 = vmatpush.msra.mxu3 %v881_v6  ;;  %v629_v55 = vld [vmem:[%s4595_s3 + $0x8] sm:$0xff] }
  0x65   : > { %976 = vmatpush.msra.mxu0 %v681_v7  ;;  %1015 = vmatpush.msra.mxu2 %v813_v9  ;;  %v693_v56 = vld [vmem:[%s4595_s3 + $0x208] sm:$0xff] }
  0x66   : > { %996 = vmatpush.msra.mxu1 %v745_v8  ;;  %1035 = vmatpush.msra.mxu3 %v877_v10  ;;  %v769_v57 = vld [vmem:[%s4595_s3 + $0x468] sm:$0xff]  ;;  %v690_v10 = vld [vmem:[%s4595_s3 + $0x1f0] sm:$0xff] }
  0x67   : > { %977 = vmatpush.msra.mxu0 %v677_v11  ;;  %1016 = vmatpush.msra.mxu2 %v809_v13  ;;  %v833_v58 = vld [vmem:[%s4595_s3 + $0x668] sm:$0xff]  ;;  %v754_v11 = vld [vmem:[%s4595_s3 + $0x3f0] sm:$0xff]  ;;  %v539_v13 = vperm.slane %v470_v1, 3 }
  0x68   : > { %997 = vmatpush.msra.mxu1 %v741_v12  ;;  %1036 = vmatpush.msra.mxu3 %v873_v14  ;;  %v765_v59 = vld [vmem:[%s4595_s3 + $0x448] sm:$0xff]  ;;  %v538_v12 = vperm.slane %v470_v1, 2  ;;  %v686_v14 = vld [vmem:[%s4595_s3 + $0x1d0] sm:$0xff] }
  0x69   : > { %978 = vmatpush.msra.mxu0 %v673_v15  ;;  %1017 = vmatpush.msra.mxu2 %v805_v17  ;;  %v829_v60 = vld [vmem:[%s4595_s3 + $0x648] sm:$0xff]  ;;  %v750_v15 = vld [vmem:[%s4595_s3 + $0x3d0] sm:$0xff] }
  0x6a   : > { %998 = vmatpush.msra.mxu1 %v737_v16  ;;  %1037 = vmatpush.msra.mxu3 %v869_v18  ;;  %v761_v61 = vld [vmem:[%s4595_s3 + $0x428] sm:$0xff]  ;;  %v682_v18 = vld [vmem:[%s4595_s3 + $0x1b0] sm:$0xff] }
  0x6b   : > { %979 = vmatpush.msra.mxu0 %v669_v19  ;;  %1018 = vmatpush.msra.mxu2 %v801_v21  ;;  %v825_v62 = vld [vmem:[%s4595_s3 + $0x628] sm:$0xff]  ;;  %v746_v19 = vld [vmem:[%s4595_s3 + $0x3b0] sm:$0xff] }
  0x6c   : > { %999 = vmatpush.msra.mxu1 %v733_v20  ;;  %1038 = vmatpush.msra.mxu3 %v865_v22  ;;  %v757_v63 = vld [vmem:[%s4595_s3 + $0x408] sm:$0xff]  ;;  %v702_v1 = vld [vmem:[%s4595_s3 + $0x250] sm:$0xff] }
  0x6d   : > { %980 = vmatpush.msra.mxu0 %v665_v23  ;;  %1019 = vmatpush.msra.mxu2 %v797_v25  ;;  %v821_v0 = vld [vmem:[%s4595_s3 + $0x608] sm:$0xff]  ;;  %v742_v25 = vld [vmem:[%s4595_s3 + $0x390] sm:$0xff] }
  0x6e   : > { %1000 = vmatpush.msra.mxu1 %v729_v24  ;;  %1039 = vmatpush.msra.mxu3 %v861_v26  ;;  %v678_v24 = vld [vmem:[%s4595_s3 + $0x190] sm:$0xff] }
  0x6f   : > { %981 = vmatpush.msra.mxu0 %v661_v27  ;;  %1020 = vmatpush.msra.mxu2 %v793_v29  ;;  %v818_v26 = vld [vmem:[%s4595_s3 + $0x5f0] sm:$0xff] }
  0x70   : > { %1001 = vmatpush.msra.mxu1 %v725_v28  ;;  %1040 = vmatpush.msra.mxu3 %v857_v30  ;;  %v882_v27 = vld [vmem:[%s4595_s3 + $0x7f0] sm:$0xff] }
  0x71   : > { %982 = vmatpush.msra.mxu0 %v657_v31  ;;  %1021 = vmatpush.msra.mxu2 %v789_v33  ;;  %v738_v28 = vld [vmem:[%s4595_s3 + $0x370] sm:$0xff] }
  0x72   : > { %1002 = vmatpush.msra.mxu1 %v721_v32  ;;  %1041 = vmatpush.msra.mxu3 %v853_v34  ;;  %v674_v29 = vld [vmem:[%s4595_s3 + $0x170] sm:$0xff] }
  0x73   : > { %983 = vmatpush.msra.mxu0 %v653_v35  ;;  %1022 = vmatpush.msra.mxu2 %v785_v37  ;;  %v814_v30 = vld [vmem:[%s4595_s3 + $0x5d0] sm:$0xff] }
  0x74   : > { %1003 = vmatpush.msra.mxu1 %v717_v36  ;;  %1042 = vmatpush.msra.mxu3 %v849_v38  ;;  %v878_v31 = vld [vmem:[%s4595_s3 + $0x7d0] sm:$0xff] }
  0x75   : > { %984 = vmatpush.msra.mxu0 %v649_v39  ;;  %1023 = vmatpush.msra.mxu2 %v781_v41  ;;  %v670_v32 = vld [vmem:[%s4595_s3 + $0x150] sm:$0xff] }
  0x76   : > { %1004 = vmatpush.msra.mxu1 %v713_v40  ;;  %1043 = vmatpush.msra.mxu3 %v845_v42  ;;  %v734_v33 = vld [vmem:[%s4595_s3 + $0x350] sm:$0xff] }
  0x77   : > { %985 = vmatpush.msra.mxu0 %v645_v43  ;;  %1024 = vmatpush.msra.mxu2 %v777_v49  ;;  %v810_v34 = vld [vmem:[%s4595_s3 + $0x5b0] sm:$0xff] }
  0x78   : > { %1005 = vmatpush.msra.mxu1 %v709_v44  ;;  %1044 = vmatpush.msra.mxu3 %v841_v50  ;;  %v874_v35 = vld [vmem:[%s4595_s3 + $0x7b0] sm:$0xff] }
  0x79   : > { %986 = vmatpush.msra.mxu0 %v641_v45  ;;  %1025 = vmatpush.msra.mxu2 %v773_v53  ;;  %v666_v36 = vld [vmem:[%s4595_s3 + $0x130] sm:$0xff] }
  0x7a   : > { %1006 = vmatpush.msra.mxu1 %v705_v46  ;;  %1045 = vmatpush.msra.mxu3 %v837_v54  ;;  %v730_v37 = vld [vmem:[%s4595_s3 + $0x330] sm:$0xff] }
  0x7b   : > { %987 = vmatpush.msra.mxu0 %v637_v47  ;;  %1026 = vmatpush.msra.mxu2 %v769_v57  ;;  %v806_v38 = vld [vmem:[%s4595_s3 + $0x590] sm:$0xff] }
  0x7c   : > { %1007 = vmatpush.msra.mxu1 %v701_v48  ;;  %1046 = vmatpush.msra.mxu3 %v833_v58  ;;  %v870_v39 = vld [vmem:[%s4595_s3 + $0x790] sm:$0xff] }
  0x7d   : > { %988 = vmatpush.msra.mxu0 %v633_v51  ;;  %1027 = vmatpush.msra.mxu2 %v765_v59  ;;  %v662_v40 = vld [vmem:[%s4595_s3 + $0x110] sm:$0xff] }
  0x7e   : > { %1008 = vmatpush.msra.mxu1 %v697_v52  ;;  %1047 = vmatpush.msra.mxu3 %v829_v60  ;;  %v726_v41 = vld [vmem:[%s4595_s3 + $0x310] sm:$0xff] }
  0x7f   : > { %989 = vmatpush.msra.mxu0 %v629_v55  ;;  %1028 = vmatpush.msra.mxu2 %v761_v61  ;;  %v802_v42 = vld [vmem:[%s4595_s3 + $0x570] sm:$0xff] }
  0x80   : > { %1009 = vmatpush.msra.mxu1 %v693_v56  ;;  %1048 = vmatpush.msra.mxu3 %v825_v62  ;;  %v866_v43 = vld [vmem:[%s4595_s3 + $0x770] sm:$0xff] }
  0x81   : > { %1029 = vmatpush.msra.mxu2 %v757_v63  ;;  %v658_v44 = vld [vmem:[%s4595_s3 + $0xf0] sm:$0xff] }
  0x82   : > { %1049 = vmatpush.msra.mxu3 %v821_v0  ;;  %v722_v45 = vld [vmem:[%s4595_s3 + $0x2f0] sm:$0xff] }
  0x83   : > { %v798_v46 = vld [vmem:[%s4595_s3 + $0x550] sm:$0xff] }
  0x84   : > { %v862_v47 = vld [vmem:[%s4595_s3 + $0x750] sm:$0xff] }
  0x85   : > { %v654_v48 = vld [vmem:[%s4595_s3 + $0xd0] sm:$0xff] }
  0x86   : > { %v718_v49 = vld [vmem:[%s4595_s3 + $0x2d0] sm:$0xff] }
  0x87   : > { %v794_v50 = vld [vmem:[%s4595_s3 + $0x530] sm:$0xff] }
  0x88   : > { %v858_v51 = vld [vmem:[%s4595_s3 + $0x730] sm:$0xff] }
  0x89   : > { %v650_v52 = vld [vmem:[%s4595_s3 + $0xb0] sm:$0xff] }
  0x8a   : > { %v714_v53 = vld [vmem:[%s4595_s3 + $0x2b0] sm:$0xff] }
  0x8b   : > { %v790_v54 = vld [vmem:[%s4595_s3 + $0x510] sm:$0xff] }
  0x8c   : > { %v854_v55 = vld [vmem:[%s4595_s3 + $0x710] sm:$0xff] }
  0x8d   : > { %v646_v56 = vld [vmem:[%s4595_s3 + $0x90] sm:$0xff] }
  0x8e   : > { %v710_v57 = vld [vmem:[%s4595_s3 + $0x290] sm:$0xff] }
  0x8f   : > { %v786_v58 = vld [vmem:[%s4595_s3 + $0x4f0] sm:$0xff] }
  0x90   : > { %v850_v59 = vld [vmem:[%s4595_s3 + $0x6f0] sm:$0xff] }
  0x91   : > { %v642_v60 = vld [vmem:[%s4595_s3 + $0x70] sm:$0xff] }
  0x92   : > { %v706_v61 = vld [vmem:[%s4595_s3 + $0x270] sm:$0xff] }
  0x93   : > { %v782_v62 = vld [vmem:[%s4595_s3 + $0x4d0] sm:$0xff] }
  0x94   : > { %v846_v63 = vld [vmem:[%s4595_s3 + $0x6d0] sm:$0xff] }
  0x95   : > { %v638_v0 = vld [vmem:[%s4595_s3 + $0x50] sm:$0xff] }
  0xaa   : > { %v561_v4 = vpop.f32.mrf.mxu0  ;;  %v581_v5 = vpop.f32.mrf.mxu1 }
  0xab   : > { %v562_v6 = vadd.f32 %v561_v4, %v536_v2  ;;  %v582_v7 = vadd.f32 %v581_v5, %v537_v3  ;;  %v778_v2 = vld [vmem:[%s4595_s3 + $0x4b0] sm:$0xff] }
  0xac   : > { %v842_v3 = vld [vmem:[%s4595_s3 + $0x6b0] sm:$0xff] }
  0xad   : > { %v2965_v8 = vmax.f32 %v562_v6, 0.0  ;;  %v2967_v9 = vmax.f32 %v582_v7, 0.0  ;;  %v634_v4 = vld [vmem:[%s4595_s3 + $0x30] sm:$0xff] }
  0xae   : > { %v698_v5 = vld [vmem:[%s4595_s3 + $0x230] sm:$0xff] }
  0xaf   : > { %910 = vmatmul.f32.vlgmr.msrb.gmra.mxu0 %v2965_v8  ;;  %930 = vmatmul.f32.vlgmr.msrb.gmra.mxu1 %v2967_v9  ;;  %v774_v6 = vld [vmem:[%s4595_s3 + $0x490] sm:$0xff] }
  0xb0   : > { %1054 = vmatpush.msrb.mxu0 %v690_v10  ;;  %1074 = vmatpush.msrb.mxu1 %v754_v11  ;;  %v838_v7 = vld [vmem:[%s4595_s3 + $0x690] sm:$0xff] }
  0xb1   : > { %v601_v16 = vpop.f32.mrf.mxu2  ;;  %v621_v17 = vpop.f32.mrf.mxu3  ;;  %v630_v10 = vld [vmem:[%s4595_s3 + $0x10] sm:$0xff] }
  0xb2   : > { %v602_v20 = vadd.f32 %v601_v16, %v538_v12  ;;  %v622_v21 = vadd.f32 %v621_v17, %v539_v13  ;;  %1055 = vmatpush.msrb.mxu0 %v686_v14  ;;  %1075 = vmatpush.msrb.mxu1 %v750_v15  ;;  %v694_v11 = vld [vmem:[%s4595_s3 + $0x210] sm:$0xff]  ;;  %v691_v14 = vld [vmem:[%s4595_s3 + $0x1f8] sm:$0xff] }
  0xb3   : > { %v770_v12 = vld [vmem:[%s4595_s3 + $0x470] sm:$0xff]  ;;  %v755_v15 = vld [vmem:[%s4595_s3 + $0x3f8] sm:$0xff] }
  0xb4   : > { %v2989_v22 = vmax.f32 %v602_v20, 0.0  ;;  %v2991_v23 = vmax.f32 %v622_v21, 0.0  ;;  %1056 = vmatpush.msrb.mxu0 %v682_v18  ;;  %1076 = vmatpush.msrb.mxu1 %v746_v19  ;;  %v834_v13 = vld [vmem:[%s4595_s3 + $0x670] sm:$0xff]  ;;  %v687_v18 = vld [vmem:[%s4595_s3 + $0x1d8] sm:$0xff] }
  0xb5   : > { %v766_v16 = vld [vmem:[%s4595_s3 + $0x450] sm:$0xff]  ;;  %v751_v19 = vld [vmem:[%s4595_s3 + $0x3d8] sm:$0xff] }
  0xb6   : > { %950 = vmatmul.f32.vlgmr.msrb.gmra.mxu2 %v2989_v22  ;;  %970 = vmatmul.f32.vlgmr.msrb.gmra.mxu3 %v2991_v23  ;;  %v830_v17 = vld [vmem:[%s4595_s3 + $0x650] sm:$0xff] }
  0xb7   : > { %1057 = vmatpush.msrb.mxu0 %v678_v24  ;;  %1077 = vmatpush.msrb.mxu1 %v742_v25  ;;  %v762_v20 = vld [vmem:[%s4595_s3 + $0x430] sm:$0xff]  ;;  %v683_v24 = vld [vmem:[%s4595_s3 + $0x1b8] sm:$0xff] }
  0xb8   : > { %1094 = vmatpush.msrb.mxu2 %v818_v26  ;;  %1114 = vmatpush.msrb.mxu3 %v882_v27  ;;  %v826_v21 = vld [vmem:[%s4595_s3 + $0x630] sm:$0xff]  ;;  %v747_v25 = vld [vmem:[%s4595_s3 + $0x3b8] sm:$0xff] }
  0xb9   : > { %990 = vmatmul.f32.vlgmr.msra.gmra.mxu0 %v2965_v8  ;;  %1078 = vmatpush.msrb.mxu1 %v738_v28  ;;  %v758_v26 = vld [vmem:[%s4595_s3 + $0x410] sm:$0xff]  ;;  %v679_v28 = vld [vmem:[%s4595_s3 + $0x198] sm:$0xff] }
  0xba   : > { %1058 = vmatpush.msrb.mxu0 %v674_v29  ;;  %1095 = vmatpush.msrb.mxu2 %v814_v30  ;;  %v822_v27 = vld [vmem:[%s4595_s3 + $0x610] sm:$0xff]  ;;  %v743_v29 = vld [vmem:[%s4595_s3 + $0x398] sm:$0xff] }
  0xbb   : > { %1115 = vmatpush.msrb.mxu3 %v878_v31  ;;  %1010 = vmatmul.f32.vlgmr.msra.gmra.mxu1 %v2967_v9  ;;  %v819_v30 = vld [vmem:[%s4595_s3 + $0x5f8] sm:$0xff] }
  0xbc   : > { %1059 = vmatpush.msrb.mxu0 %v670_v32  ;;  %1079 = vmatpush.msrb.mxu1 %v734_v33  ;;  %v883_v31 = vld [vmem:[%s4595_s3 + $0x7f8] sm:$0xff] }
  0xbd   : > { %1096 = vmatpush.msrb.mxu2 %v810_v34  ;;  %1116 = vmatpush.msrb.mxu3 %v874_v35  ;;  %v675_v32 = vld [vmem:[%s4595_s3 + $0x178] sm:$0xff] }
  0xbe   : > { %1060 = vmatpush.msrb.mxu0 %v666_v36  ;;  %1080 = vmatpush.msrb.mxu1 %v730_v37  ;;  %v739_v33 = vld [vmem:[%s4595_s3 + $0x378] sm:$0xff] }
  0xbf   : > { %1097 = vmatpush.msrb.mxu2 %v806_v38  ;;  %1117 = vmatpush.msrb.mxu3 %v870_v39  ;;  %v815_v34 = vld [vmem:[%s4595_s3 + $0x5d8] sm:$0xff] }
  0xc0   : > { %1030 = vmatmul.f32.vlgmr.msra.gmra.mxu2 %v2989_v22  ;;  %1050 = vmatmul.f32.vlgmr.msra.gmra.mxu3 %v2991_v23  ;;  %v879_v35 = vld [vmem:[%s4595_s3 + $0x7d8] sm:$0xff] }
  0xc1   : > { %1061 = vmatpush.msrb.mxu0 %v662_v40  ;;  %1081 = vmatpush.msrb.mxu1 %v726_v41  ;;  %v671_v36 = vld [vmem:[%s4595_s3 + $0x158] sm:$0xff] }
  0xc2   : > { %1098 = vmatpush.msrb.mxu2 %v802_v42  ;;  %1118 = vmatpush.msrb.mxu3 %v866_v43  ;;  %v735_v37 = vld [vmem:[%s4595_s3 + $0x358] sm:$0xff] }
  0xc3   : > { %1062 = vmatpush.msrb.mxu0 %v658_v44  ;;  %1082 = vmatpush.msrb.mxu1 %v722_v45  ;;  %v811_v38 = vld [vmem:[%s4595_s3 + $0x5b8] sm:$0xff] }
  0xc4   : > { %1099 = vmatpush.msrb.mxu2 %v798_v46  ;;  %1119 = vmatpush.msrb.mxu3 %v862_v47  ;;  %v875_v39 = vld [vmem:[%s4595_s3 + $0x7b8] sm:$0xff] }
  0xc5   : > { %1063 = vmatpush.msrb.mxu0 %v654_v48  ;;  %1083 = vmatpush.msrb.mxu1 %v718_v49  ;;  %v667_v40 = vld [vmem:[%s4595_s3 + $0x138] sm:$0xff] }
  0xc6   : > { %1100 = vmatpush.msrb.mxu2 %v794_v50  ;;  %1120 = vmatpush.msrb.mxu3 %v858_v51  ;;  %v731_v41 = vld [vmem:[%s4595_s3 + $0x338] sm:$0xff] }
  0xc7   : > { %1064 = vmatpush.msrb.mxu0 %v650_v52  ;;  %1084 = vmatpush.msrb.mxu1 %v714_v53  ;;  %v807_v42 = vld [vmem:[%s4595_s3 + $0x598] sm:$0xff] }
  0xc8   : > { %1101 = vmatpush.msrb.mxu2 %v790_v54  ;;  %1121 = vmatpush.msrb.mxu3 %v854_v55  ;;  %v871_v43 = vld [vmem:[%s4595_s3 + $0x798] sm:$0xff] }
  0xc9   : > { %1065 = vmatpush.msrb.mxu0 %v646_v56  ;;  %1085 = vmatpush.msrb.mxu1 %v710_v57  ;;  %v663_v44 = vld [vmem:[%s4595_s3 + $0x118] sm:$0xff] }
  0xca   : > { %1102 = vmatpush.msrb.mxu2 %v786_v58  ;;  %1122 = vmatpush.msrb.mxu3 %v850_v59  ;;  %v727_v45 = vld [vmem:[%s4595_s3 + $0x318] sm:$0xff] }
  0xcb   : > { %1066 = vmatpush.msrb.mxu0 %v642_v60  ;;  %1086 = vmatpush.msrb.mxu1 %v706_v61  ;;  %v803_v46 = vld [vmem:[%s4595_s3 + $0x578] sm:$0xff] }
  0xcc   : > { %1103 = vmatpush.msrb.mxu2 %v782_v62  ;;  %1123 = vmatpush.msrb.mxu3 %v846_v63  ;;  %v867_v47 = vld [vmem:[%s4595_s3 + $0x778] sm:$0xff] }
  0xcd   : > { %1067 = vmatpush.msrb.mxu0 %v638_v0  ;;  %1087 = vmatpush.msrb.mxu1 %v702_v1  ;;  %v659_v48 = vld [vmem:[%s4595_s3 + $0xf8] sm:$0xff] }
  0xce   : > { %1104 = vmatpush.msrb.mxu2 %v778_v2  ;;  %1124 = vmatpush.msrb.mxu3 %v842_v3  ;;  %v723_v49 = vld [vmem:[%s4595_s3 + $0x2f8] sm:$0xff] }
  0xcf   : > { %1068 = vmatpush.msrb.mxu0 %v634_v4  ;;  %1088 = vmatpush.msrb.mxu1 %v698_v5  ;;  %v799_v50 = vld [vmem:[%s4595_s3 + $0x558] sm:$0xff] }
  0xd0   : > { %1105 = vmatpush.msrb.mxu2 %v774_v6  ;;  %1125 = vmatpush.msrb.mxu3 %v838_v7  ;;  %v863_v51 = vld [vmem:[%s4595_s3 + $0x758] sm:$0xff] }
  0xd1   : > { %1069 = vmatpush.msrb.mxu0 %v630_v10  ;;  %1089 = vmatpush.msrb.mxu1 %v694_v11  ;;  %v655_v52 = vld [vmem:[%s4595_s3 + $0xd8] sm:$0xff] }
  0xd2   : > { %1106 = vmatpush.msrb.mxu2 %v770_v12  ;;  %1126 = vmatpush.msrb.mxu3 %v834_v13  ;;  %v719_v53 = vld [vmem:[%s4595_s3 + $0x2d8] sm:$0xff] }
  0xd3   : > { %1070 = vmatmul.f32.vlgmr.msrb.gmra.mxu0 %v2965_v8  ;;  %1090 = vmatmul.f32.vlgmr.msrb.gmra.mxu1 %v2967_v9  ;;  %v795_v54 = vld [vmem:[%s4595_s3 + $0x538] sm:$0xff] }
  0xd4   : > { %1134 = vmatpush.msra.mxu0 %v691_v14  ;;  %1154 = vmatpush.msra.mxu1 %v755_v15  ;;  %v859_v55 = vld [vmem:[%s4595_s3 + $0x738] sm:$0xff] }
  0xd5   : > { %1107 = vmatpush.msrb.mxu2 %v766_v16  ;;  %1127 = vmatpush.msrb.mxu3 %v830_v17  ;;  %v651_v56 = vld [vmem:[%s4595_s3 + $0xb8] sm:$0xff] }
  0xd6   : > { %1135 = vmatpush.msra.mxu0 %v687_v18  ;;  %1155 = vmatpush.msra.mxu1 %v751_v19  ;;  %v715_v57 = vld [vmem:[%s4595_s3 + $0x2b8] sm:$0xff] }
  0xd7   : > { %1108 = vmatpush.msrb.mxu2 %v762_v20  ;;  %1128 = vmatpush.msrb.mxu3 %v826_v21  ;;  %v791_v58 = vld [vmem:[%s4595_s3 + $0x518] sm:$0xff]  ;;  %v1278_v20 = vld [vmem:[%s4597_s5 + $0x1e0] sm:$0xff] }
  0xd8   : > { %1136 = vmatpush.msra.mxu0 %v683_v24  ;;  %1156 = vmatpush.msra.mxu1 %v747_v25  ;;  %v855_v59 = vld [vmem:[%s4595_s3 + $0x718] sm:$0xff]  ;;  %v1342_v21 = vld [vmem:[%s4597_s5 + $0x3e0] sm:$0xff] }
  0xd9   : > { %1109 = vmatpush.msrb.mxu2 %v758_v26  ;;  %1129 = vmatpush.msrb.mxu3 %v822_v27  ;;  %v647_v60 = vld [vmem:[%s4595_s3 + $0x98] sm:$0xff]  ;;  %v1274_v26 = vld [vmem:[%s4597_s5 + $0x1c0] sm:$0xff] }
  0xda   : > { %1110 = vmatmul.f32.vlgmr.msrb.gmra.mxu2 %v2989_v22  ;;  %1130 = vmatmul.f32.vlgmr.msrb.gmra.mxu3 %v2991_v23  ;;  %v711_v61 = vld [vmem:[%s4595_s3 + $0x298] sm:$0xff] }
  0xdb   : > { %1137 = vmatpush.msra.mxu0 %v679_v28  ;;  %1157 = vmatpush.msra.mxu1 %v743_v29  ;;  %v787_v62 = vld [vmem:[%s4595_s3 + $0x4f8] sm:$0xff]  ;;  %v1270_v28 = vld [vmem:[%s4597_s5 + $0x1a0] sm:$0xff] }
  0xdc   : > { %1174 = vmatpush.msra.mxu2 %v819_v30  ;;  %1194 = vmatpush.msra.mxu3 %v883_v31  ;;  %v851_v63 = vld [vmem:[%s4595_s3 + $0x6f8] sm:$0xff]  ;;  %v1334_v29 = vld [vmem:[%s4597_s5 + $0x3a0] sm:$0xff] }
  0xdd   : > { %1138 = vmatpush.msra.mxu0 %v675_v32  ;;  %1158 = vmatpush.msra.mxu1 %v739_v33  ;;  %v643_v0 = vld [vmem:[%s4595_s3 + $0x78] sm:$0xff]  ;;  %v1406_v30 = vld [vmem:[%s4597_s5 + $0x5e0] sm:$0xff] }
  0xde   : > { %1175 = vmatpush.msra.mxu2 %v815_v34  ;;  %1195 = vmatpush.msra.mxu3 %v879_v35  ;;  %v707_v1 = vld [vmem:[%s4595_s3 + $0x278] sm:$0xff]  ;;  %v1266_v31 = vld [vmem:[%s4597_s5 + $0x180] sm:$0xff] }
  0xdf   : > { %1139 = vmatpush.msra.mxu0 %v671_v36  ;;  %1159 = vmatpush.msra.mxu1 %v735_v37  ;;  %v783_v2 = vld [vmem:[%s4595_s3 + $0x4d8] sm:$0xff]  ;;  %v1330_v32 = vld [vmem:[%s4597_s5 + $0x380] sm:$0xff] }
  0xe0   : > { %1176 = vmatpush.msra.mxu2 %v811_v38  ;;  %1196 = vmatpush.msra.mxu3 %v875_v39  ;;  %v847_v3 = vld [vmem:[%s4595_s3 + $0x6d8] sm:$0xff]  ;;  %v1402_v33 = vld [vmem:[%s4597_s5 + $0x5c0] sm:$0xff] }
  0xe1   : > { %1140 = vmatpush.msra.mxu0 %v667_v40  ;;  %1160 = vmatpush.msra.mxu1 %v731_v41  ;;  %v639_v4 = vld [vmem:[%s4595_s3 + $0x58] sm:$0xff]  ;;  %v1398_v34 = vld [vmem:[%s4597_s5 + $0x5a0] sm:$0xff] }
  0xe2   : > { %1177 = vmatpush.msra.mxu2 %v807_v42  ;;  %1197 = vmatpush.msra.mxu3 %v871_v43  ;;  %v703_v5 = vld [vmem:[%s4595_s3 + $0x258] sm:$0xff]  ;;  %v1258_v35 = vld [vmem:[%s4597_s5 + $0x140] sm:$0xff] }
  0xe3   : > { %1141 = vmatpush.msra.mxu0 %v663_v44  ;;  %1161 = vmatpush.msra.mxu1 %v727_v45  ;;  %v779_v6 = vld [vmem:[%s4595_s3 + $0x4b8] sm:$0xff]  ;;  %v1322_v36 = vld [vmem:[%s4597_s5 + $0x340] sm:$0xff] }
  0xe4   : > { %1178 = vmatpush.msra.mxu2 %v803_v46  ;;  %1198 = vmatpush.msra.mxu3 %v867_v47  ;;  %v843_v7 = vld [vmem:[%s4595_s3 + $0x6b8] sm:$0xff]  ;;  %v1394_v37 = vld [vmem:[%s4597_s5 + $0x580] sm:$0xff] }
  0xe5   : > { %1142 = vmatpush.msra.mxu0 %v659_v48  ;;  %1162 = vmatpush.msra.mxu1 %v723_v49  ;;  %v635_v10 = vld [vmem:[%s4595_s3 + $0x38] sm:$0xff]  ;;  %v1254_v38 = vld [vmem:[%s4597_s5 + $0x120] sm:$0xff] }
  0xe6   : > { %1179 = vmatpush.msra.mxu2 %v799_v50  ;;  %1199 = vmatpush.msra.mxu3 %v863_v51  ;;  %v699_v11 = vld [vmem:[%s4595_s3 + $0x238] sm:$0xff]  ;;  %v1318_v39 = vld [vmem:[%s4597_s5 + $0x320] sm:$0xff] }
  0xe7   : > { %1143 = vmatpush.msra.mxu0 %v655_v52  ;;  %1163 = vmatpush.msra.mxu1 %v719_v53  ;;  %v775_v12 = vld [vmem:[%s4595_s3 + $0x498] sm:$0xff]  ;;  %v1390_v40 = vld [vmem:[%s4597_s5 + $0x560] sm:$0xff] }
  0xe8   : > { %1180 = vmatpush.msra.mxu2 %v795_v54  ;;  %1200 = vmatpush.msra.mxu3 %v859_v55  ;;  %v839_v13 = vld [vmem:[%s4595_s3 + $0x698] sm:$0xff]  ;;  %v1250_v41 = vld [vmem:[%s4597_s5 + $0x100] sm:$0xff] }
  0xe9   : > { %1144 = vmatpush.msra.mxu0 %v651_v56  ;;  %1164 = vmatpush.msra.mxu1 %v715_v57  ;;  %v631_v14 = vld [vmem:[%s4595_s3 + $0x18] sm:$0xff]  ;;  %v1314_v42 = vld [vmem:[%s4597_s5 + $0x300] sm:$0xff] }
  0xea   : > { %1181 = vmatpush.msra.mxu2 %v791_v58  ;;  %1201 = vmatpush.msra.mxu3 %v855_v59  ;;  %v695_v15 = vld [vmem:[%s4595_s3 + $0x218] sm:$0xff]  ;;  %v1386_v43 = vld [vmem:[%s4597_s5 + $0x540] sm:$0xff] }
  0xeb   : > { %1145 = vmatpush.msra.mxu0 %v647_v60  ;;  %1165 = vmatpush.msra.mxu1 %v711_v61  ;;  %v771_v16 = vld [vmem:[%s4595_s3 + $0x478] sm:$0xff]  ;;  %v1246_v44 = vld [vmem:[%s4597_s5 + $0xe0] sm:$0xff] }
  0xec   : > { %1182 = vmatpush.msra.mxu2 %v787_v62  ;;  %1202 = vmatpush.msra.mxu3 %v851_v63  ;;  %v835_v17 = vld [vmem:[%s4595_s3 + $0x678] sm:$0xff]  ;;  %v1310_v45 = vld [vmem:[%s4597_s5 + $0x2e0] sm:$0xff] }
  0xed   : > { %1146 = vmatpush.msra.mxu0 %v643_v0  ;;  %1166 = vmatpush.msra.mxu1 %v707_v1  ;;  %v767_v18 = vld [vmem:[%s4595_s3 + $0x458] sm:$0xff]  ;;  %v1242_v46 = vld [vmem:[%s4597_s5 + $0xc0] sm:$0xff]  ;;  %v1279_v0 = vld [vmem:[%s4597_s5 + $0x1e8] sm:$0xff] }
  0xee   : > { %1183 = vmatpush.msra.mxu2 %v783_v2  ;;  %1203 = vmatpush.msra.mxu3 %v847_v3  ;;  %v831_v19 = vld [vmem:[%s4595_s3 + $0x658] sm:$0xff]  ;;  %v1306_v47 = vld [vmem:[%s4597_s5 + $0x2c0] sm:$0xff]  ;;  %v1343_v1 = vld [vmem:[%s4597_s5 + $0x3e8] sm:$0xff] }
  0xef   : > { %1147 = vmatpush.msra.mxu0 %v639_v4  ;;  %1167 = vmatpush.msra.mxu1 %v703_v5  ;;  %v763_v24 = vld [vmem:[%s4595_s3 + $0x438] sm:$0xff]  ;;  %v1238_v48 = vld [vmem:[%s4597_s5 + $0xa0] sm:$0xff]  ;;  %v1275_v2 = vld [vmem:[%s4597_s5 + $0x1c8] sm:$0xff] }
  0xf0   : > { %1184 = vmatpush.msra.mxu2 %v779_v6  ;;  %1204 = vmatpush.msra.mxu3 %v843_v7  ;;  %v827_v25 = vld [vmem:[%s4595_s3 + $0x638] sm:$0xff]  ;;  %v1302_v49 = vld [vmem:[%s4597_s5 + $0x2a0] sm:$0xff]  ;;  %v1339_v3 = vld [vmem:[%s4597_s5 + $0x3c8] sm:$0xff] }
  0xf1   : > { %1148 = vmatpush.msra.mxu0 %v635_v10  ;;  %1168 = vmatpush.msra.mxu1 %v699_v11  ;;  %v823_v27 = vld [vmem:[%s4595_s3 + $0x618] sm:$0xff]  ;;  %v1234_v50 = vld [vmem:[%s4597_s5 + $0x80] sm:$0xff]  ;;  %v1271_v5 = vld [vmem:[%s4597_s5 + $0x1a8] sm:$0xff] }
  0xf2   : > { %1185 = vmatpush.msra.mxu2 %v775_v12  ;;  %1205 = vmatpush.msra.mxu3 %v839_v13  ;;  %v1298_v51 = vld [vmem:[%s4597_s5 + $0x280] sm:$0xff]  ;;  %v1335_v6 = vld [vmem:[%s4597_s5 + $0x3a8] sm:$0xff] }
  0xf3   : > { %1149 = vmatpush.msra.mxu0 %v631_v14  ;;  %1169 = vmatpush.msra.mxu1 %v695_v15  ;;  %v1230_v52 = vld [vmem:[%s4597_s5 + $0x60] sm:$0xff]  ;;  %v1267_v10 = vld [vmem:[%s4597_s5 + $0x188] sm:$0xff] }
  0xf4   : > { %1186 = vmatpush.msra.mxu2 %v771_v16  ;;  %1206 = vmatpush.msra.mxu3 %v835_v17  ;;  %v1294_v53 = vld [vmem:[%s4597_s5 + $0x260] sm:$0xff]  ;;  %v1331_v11 = vld [vmem:[%s4597_s5 + $0x388] sm:$0xff] }
  0xf5   : > { %1150 = vmatmul.f32.vlgmr.msra.gmra.mxu0 %v2965_v8  ;;  %1170 = vmatmul.f32.vlgmr.msra.gmra.mxu1 %v2967_v9  ;;  %v1338_v8 = vld [vmem:[%s4597_s5 + $0x3c0] sm:$0xff]  ;;  %v759_v9 = vld [vmem:[%s4595_s3 + $0x418] sm:$0xff]  ;;  %v1263_v12 = vld [vmem:[%s4597_s5 + $0x168] sm:$0xff] }
  0xf6   : > { %1187 = vmatpush.msra.mxu2 %v767_v18  ;;  %1207 = vmatpush.msra.mxu3 %v831_v19  ;;  %v1382_v54 = vld [vmem:[%s4597_s5 + $0x520] sm:$0xff]  ;;  %v1327_v13 = vld [vmem:[%s4597_s5 + $0x368] sm:$0xff] }
  0xf7   : > { %1484 = vmatpush.msrb.mxu0 %v1278_v20  ;;  %1504 = vmatpush.msrb.mxu1 %v1342_v21  ;;  %v1226_v55 = vld [vmem:[%s4597_s5 + $0x40] sm:$0xff]  ;;  %v1259_v14 = vld [vmem:[%s4597_s5 + $0x148] sm:$0xff] }
  0xf8   : > { %1188 = vmatpush.msra.mxu2 %v763_v24  ;;  %1208 = vmatpush.msra.mxu3 %v827_v25  ;;  %v1290_v56 = vld [vmem:[%s4597_s5 + $0x240] sm:$0xff]  ;;  %v1323_v15 = vld [vmem:[%s4597_s5 + $0x348] sm:$0xff] }
  0xf9   : > { %1485 = vmatpush.msrb.mxu0 %v1274_v26  ;;  %1505 = vmatpush.msrb.mxu1 %v1338_v8  ;;  %v1378_v57 = vld [vmem:[%s4597_s5 + $0x500] sm:$0xff]  ;;  %v1255_v18 = vld [vmem:[%s4597_s5 + $0x128] sm:$0xff] }
  0xfa   : > { %1189 = vmatpush.msra.mxu2 %v759_v9  ;;  %1209 = vmatpush.msra.mxu3 %v823_v27  ;;  %v1374_v58 = vld [vmem:[%s4597_s5 + $0x4e0] sm:$0xff]  ;;  %v1319_v19 = vld [vmem:[%s4597_s5 + $0x328] sm:$0xff] }
  0xfb   : > { %1190 = vmatmul.f32.vlgmr.msra.gmra.mxu2 %v2989_v22  ;;  %1210 = vmatmul.f32.vlgmr.msra.gmra.mxu3 %v2991_v23  ;;  %v1262_v22 = vld [vmem:[%s4597_s5 + $0x160] sm:$0xff]  ;;  %v1251_v21 = vld [vmem:[%s4597_s5 + $0x108] sm:$0xff] }
  0xfc   : > { %1486 = vmatpush.msrb.mxu0 %v1270_v28  ;;  %1506 = vmatpush.msrb.mxu1 %v1334_v29  ;;  %v1326_v23 = vld [vmem:[%s4597_s5 + $0x360] sm:$0xff]  ;;  %v1315_v24 = vld [vmem:[%s4597_s5 + $0x308] sm:$0xff] }
  0xfd   : > { %1524 = vmatpush.msrb.mxu2 %v1406_v30  ;;  %v1222_v59 = vld [vmem:[%s4597_s5 + $0x20] sm:$0xff]  ;;  %v1247_v8 = vld [vmem:[%s4597_s5 + $0xe8] sm:$0xff] }
  0xfe   : > { %1487 = vmatpush.msrb.mxu0 %v1266_v31  ;;  %1507 = vmatpush.msrb.mxu1 %v1330_v32  ;;  %v1286_v60 = vld [vmem:[%s4597_s5 + $0x220] sm:$0xff]  ;;  %v1311_v9 = vld [vmem:[%s4597_s5 + $0x2e8] sm:$0xff] }
  0xff   : > { %1525 = vmatpush.msrb.mxu2 %v1402_v33  ;;  %v1370_v61 = vld [vmem:[%s4597_s5 + $0x4c0] sm:$0xff]  ;;  %v1407_v27 = vld [vmem:[%s4597_s5 + $0x5e8] sm:$0xff] }
 0x100   : > { %1488 = vmatpush.msrb.mxu0 %v1262_v22  ;;  %1508 = vmatpush.msrb.mxu1 %v1326_v23  ;;  %v1218_v62 = vld [vmem:[%s4597_s5] sm:$0xff]  ;;  %v1243_v28 = vld [vmem:[%s4597_s5 + $0xc8] sm:$0xff] }
 0x101   : > { %1526 = vmatpush.msrb.mxu2 %v1398_v34  ;;  %v1282_v63 = vld [vmem:[%s4597_s5 + $0x200] sm:$0xff]  ;;  %v1307_v29 = vld [vmem:[%s4597_s5 + $0x2c8] sm:$0xff] }
 0x102   : > { %1489 = vmatpush.msrb.mxu0 %v1258_v35  ;;  %1509 = vmatpush.msrb.mxu1 %v1322_v36  ;;  %v1366_v4 = vld [vmem:[%s4597_s5 + $0x4a0] sm:$0xff]  ;;  %v1239_v30 = vld [vmem:[%s4597_s5 + $0xa8] sm:$0xff] }
 0x103   : > { %1527 = vmatpush.msrb.mxu2 %v1394_v37  ;;  %v1362_v7 = vld [vmem:[%s4597_s5 + $0x480] sm:$0xff]  ;;  %v1303_v31 = vld [vmem:[%s4597_s5 + $0x2a8] sm:$0xff] }
 0x104   : > { %1490 = vmatpush.msrb.mxu0 %v1254_v38  ;;  %1510 = vmatpush.msrb.mxu1 %v1318_v39  ;;  %v1358_v16 = vld [vmem:[%s4597_s5 + $0x460] sm:$0xff]  ;;  %v1403_v33 = vld [vmem:[%s4597_s5 + $0x5c8] sm:$0xff] }
 0x105   : > { %1528 = vmatpush.msrb.mxu2 %v1390_v40  ;;  %v1354_v17 = vld [vmem:[%s4597_s5 + $0x440] sm:$0xff]  ;;  %v1399_v23 = vld [vmem:[%s4597_s5 + $0x5a8] sm:$0xff] }
 0x106   : > { %1491 = vmatpush.msrb.mxu0 %v1250_v41  ;;  %1511 = vmatpush.msrb.mxu1 %v1314_v42  ;;  %v1350_v20 = vld [vmem:[%s4597_s5 + $0x420] sm:$0xff]  ;;  %v1235_v34 = vld [vmem:[%s4597_s5 + $0x88] sm:$0xff] }
 0x107   : > { %1529 = vmatpush.msrb.mxu2 %v1386_v43  ;;  %v1470_v25 = vld [vmem:[%s4597_s5 + $0x7e0] sm:$0xff]  ;;  %v1299_v35 = vld [vmem:[%s4597_s5 + $0x288] sm:$0xff] }
 0x108   : > { %1492 = vmatpush.msrb.mxu0 %v1246_v44  ;;  %1512 = vmatpush.msrb.mxu1 %v1310_v45  ;;  %v1346_v26 = vld [vmem:[%s4597_s5 + $0x400] sm:$0xff]  ;;  %v1395_v38 = vld [vmem:[%s4597_s5 + $0x588] sm:$0xff] }
 0x109   : > { %1530 = vmatpush.msrb.mxu2 %v1382_v54  ;;  %1544 = vmatpush.msrb.mxu3 %v1470_v25  ;;  %v1466_v32 = vld [vmem:[%s4597_s5 + $0x7c0] sm:$0xff]  ;;  %v1231_v39 = vld [vmem:[%s4597_s5 + $0x68] sm:$0xff] }
 0x10a   : > { %1493 = vmatpush.msrb.mxu0 %v1242_v46  ;;  %1513 = vmatpush.msrb.mxu1 %v1306_v47  ;;  %v1462_v22 = vld [vmem:[%s4597_s5 + $0x7a0] sm:$0xff]  ;;  %v1295_v40 = vld [vmem:[%s4597_s5 + $0x268] sm:$0xff] }
 0x10b   : > { %1531 = vmatpush.msrb.mxu2 %v1378_v57  ;;  %1545 = vmatpush.msrb.mxu3 %v1466_v32  ;;  %v3610_v36 = vld [vmem:[%s4596_s4] sm:$0xf]  ;;  %v1391_v42 = vld [vmem:[%s4597_s5 + $0x568] sm:$0xff] }
 0x10c   : > { %1494 = vmatpush.msrb.mxu0 %v1238_v48  ;;  %1514 = vmatpush.msrb.mxu1 %v1302_v49  ;;  %v1458_v37 = vld [vmem:[%s4597_s5 + $0x780] sm:$0xff]  ;;  %v886_v43 = vperm.slane %v3610_v36, 0  ;;  %v1227_v44 = vld [vmem:[%s4597_s5 + $0x48] sm:$0xff] }
 0x10d   : > { %1532 = vmatpush.msrb.mxu2 %v1374_v58  ;;  %1546 = vmatpush.msrb.mxu3 %v1462_v22  ;;  %v1454_v41 = vld [vmem:[%s4597_s5 + $0x760] sm:$0xff]  ;;  %v1291_v45 = vld [vmem:[%s4597_s5 + $0x248] sm:$0xff] }
 0x10e   : > { %1495 = vmatpush.msrb.mxu0 %v1234_v50  ;;  %1515 = vmatpush.msrb.mxu1 %v1298_v51  ;;  %v1450_v46 = vld [vmem:[%s4597_s5 + $0x740] sm:$0xff]  ;;  %v1387_v47 = vld [vmem:[%s4597_s5 + $0x548] sm:$0xff] }
 0x10f   : > { %1533 = vmatpush.msrb.mxu2 %v1370_v61  ;;  %1547 = vmatpush.msrb.mxu3 %v1458_v37  ;;  %v1223_v48 = vld [vmem:[%s4597_s5 + $0x28] sm:$0xff]  ;;  %v1446_v54 = vld [vmem:[%s4597_s5 + $0x720] sm:$0xff] }
 0x110   : > { %1496 = vmatpush.msrb.mxu0 %v1230_v52  ;;  %1516 = vmatpush.msrb.mxu1 %v1294_v53  ;;  %v1287_v49 = vld [vmem:[%s4597_s5 + $0x228] sm:$0xff]  ;;  %v1414_v25 = vld [vmem:[%s4597_s5 + $0x620] sm:$0xff] }
 0x111   : > { %1534 = vmatpush.msrb.mxu2 %v1366_v4  ;;  %1548 = vmatpush.msrb.mxu3 %v1454_v41  ;;  %v1219_v51 = vld [vmem:[%s4597_s5 + $0x8] sm:$0xff]  ;;  %v1336_v41 = vld [vmem:[%s4597_s5 + $0x3b0] sm:$0xff] }
 0x112   : > { %1497 = vmatpush.msrb.mxu0 %v1226_v55  ;;  %1517 = vmatpush.msrb.mxu1 %v1290_v56  ;;  %v1283_v53 = vld [vmem:[%s4597_s5 + $0x208] sm:$0xff]  ;;  %v1442_v56 = vld [vmem:[%s4597_s5 + $0x700] sm:$0xff] }
 0x113   : > { %1535 = vmatpush.msrb.mxu2 %v1362_v7  ;;  %1549 = vmatpush.msrb.mxu3 %v1450_v46  ;;  %v1383_v55 = vld [vmem:[%s4597_s5 + $0x528] sm:$0xff]  ;;  %v1426_v7 = vld [vmem:[%s4597_s5 + $0x680] sm:$0xff] }
 0x114   : > { %1498 = vmatpush.msrb.mxu0 %v1222_v59  ;;  %1518 = vmatpush.msrb.mxu1 %v1286_v60  ;;  %v1379_v57 = vld [vmem:[%s4597_s5 + $0x508] sm:$0xff]  ;;  %v1438_v59 = vld [vmem:[%s4597_s5 + $0x6e0] sm:$0xff] }
 0x115   : > { %1536 = vmatpush.msrb.mxu2 %v1358_v16  ;;  %1550 = vmatpush.msrb.mxu3 %v1446_v54  ;;  %v1375_v60 = vld [vmem:[%s4597_s5 + $0x4e8] sm:$0xff]  ;;  %v1320_v54 = vld [vmem:[%s4597_s5 + $0x330] sm:$0xff] }
 0x116   : > { %1499 = vmatpush.msrb.mxu0 %v1218_v62  ;;  %1519 = vmatpush.msrb.mxu1 %v1282_v63  ;;  %v1434_v62 = vld [vmem:[%s4597_s5 + $0x6c0] sm:$0xff]  ;;  %v1371_v63 = vld [vmem:[%s4597_s5 + $0x4c8] sm:$0xff] }
 0x117   : > { %1537 = vmatpush.msrb.mxu2 %v1354_v17  ;;  %1551 = vmatpush.msrb.mxu3 %v1442_v56  ;;  %v1359_v16 = vld [vmem:[%s4597_s5 + $0x468] sm:$0xff] }
 0x118   : > { %1564 = vmatpush.msra.mxu0 %v1279_v0  ;;  %1584 = vmatpush.msra.mxu1 %v1343_v1  ;;  %v1430_v1 = vld [vmem:[%s4597_s5 + $0x6a0] sm:$0xff]  ;;  %v1467_v22 = vld [vmem:[%s4597_s5 + $0x7c8] sm:$0xff] }
 0x119   : > { %1538 = vmatpush.msrb.mxu2 %v1350_v20  ;;  %1552 = vmatpush.msrb.mxu3 %v1438_v59  ;;  %v1355_v20 = vld [vmem:[%s4597_s5 + $0x448] sm:$0xff]  ;;  %v1232_v59 = vld [vmem:[%s4597_s5 + $0x70] sm:$0xff] }
 0x11a   : > { %1565 = vmatpush.msra.mxu0 %v1275_v2  ;;  %1585 = vmatpush.msra.mxu1 %v1339_v3  ;;  %v1367_v2 = vld [vmem:[%s4597_s5 + $0x4a8] sm:$0xff]  ;;  %v887_v3 = vperm.slane %v3610_v36, 1 }
 0x11b   : > { %1539 = vmatpush.msrb.mxu2 %v1346_v26  ;;  %1553 = vmatpush.msrb.mxu3 %v1434_v62  ;;  %v1351_v26 = vld [vmem:[%s4597_s5 + $0x428] sm:$0xff]  ;;  %v1312_v62 = vld [vmem:[%s4597_s5 + $0x2f0] sm:$0xff] }
 0x11c   : > { %1566 = vmatpush.msra.mxu0 %v1271_v5  ;;  %1586 = vmatpush.msra.mxu1 %v1335_v6  ;;  %v1463_v37 = vld [vmem:[%s4597_s5 + $0x7a8] sm:$0xff] }
 0x11d   : > { %1604 = vmatpush.msra.mxu2 %v1407_v27  ;;  %1554 = vmatpush.msrb.mxu3 %v1430_v1  ;;  %v1451_v46 = vld [vmem:[%s4597_s5 + $0x748] sm:$0xff]  ;;  %v1308_v1 = vld [vmem:[%s4597_s5 + $0x2d0] sm:$0xff] }
 0x11e   : > { %1567 = vmatpush.msra.mxu0 %v1267_v10  ;;  %1587 = vmatpush.msra.mxu1 %v1331_v11  ;;  %v1363_v10 = vld [vmem:[%s4597_s5 + $0x488] sm:$0xff] }
 0x11f   : > { %1605 = vmatpush.msra.mxu2 %v1403_v33  ;;  %1555 = vmatpush.msrb.mxu3 %v1426_v7  ;;  %v1264_v33 = vld [vmem:[%s4597_s5 + $0x170] sm:$0xff] }
 0x120   : > { %1568 = vmatpush.msra.mxu0 %v1263_v12  ;;  %1588 = vmatpush.msra.mxu1 %v1327_v13  ;;  %v1220_v7 = vld [vmem:[%s4597_s5 + $0x10] sm:$0xff] }
 0x121   : > { %1606 = vmatpush.msra.mxu2 %v1399_v23 }
 0x122   : > { %1569 = vmatpush.msra.mxu0 %v1259_v14  ;;  %1589 = vmatpush.msra.mxu1 %v1323_v15  ;;  %v1280_v14 = vld [vmem:[%s4597_s5 + $0x1f0] sm:$0xff]  ;;  %v1422_v15 = vld [vmem:[%s4597_s5 + $0x660] sm:$0xff] }
 0x123   : > { %1607 = vmatpush.msra.mxu2 %v1395_v38  ;;  %1556 = vmatpush.msrb.mxu3 %v1422_v15  ;;  %v1340_v38 = vld [vmem:[%s4597_s5 + $0x3d0] sm:$0xff]  ;;  %v1281_v15 = vld [vmem:[%s4597_s5 + $0x1f8] sm:$0xff] }
 0x124   : > { %1570 = vmatpush.msra.mxu0 %v1255_v18  ;;  %1590 = vmatpush.msra.mxu1 %v1319_v19  ;;  %v1276_v18 = vld [vmem:[%s4597_s5 + $0x1d0] sm:$0xff]  ;;  %v1418_v19 = vld [vmem:[%s4597_s5 + $0x640] sm:$0xff] }
 0x125   : > { %1608 = vmatpush.msra.mxu2 %v1391_v42  ;;  %1557 = vmatpush.msrb.mxu3 %v1418_v19  ;;  %v1252_v42 = vld [vmem:[%s4597_s5 + $0x110] sm:$0xff] }
 0x126   : > { %1571 = vmatpush.msra.mxu0 %v1251_v21  ;;  %1591 = vmatpush.msra.mxu1 %v1315_v24  ;;  %v1272_v24 = vld [vmem:[%s4597_s5 + $0x1b0] sm:$0xff] }
 0x127   : > { %1609 = vmatpush.msra.mxu2 %v1387_v47  ;;  %1558 = vmatpush.msrb.mxu3 %v1414_v25  ;;  %v1328_v47 = vld [vmem:[%s4597_s5 + $0x370] sm:$0xff] }
 0x128   : > { %1572 = vmatpush.msra.mxu0 %v1247_v8  ;;  %1592 = vmatpush.msra.mxu1 %v1311_v9  ;;  %v1410_v9 = vld [vmem:[%s4597_s5 + $0x600] sm:$0xff]  ;;  %v1296_v19 = vld [vmem:[%s4597_s5 + $0x270] sm:$0xff] }
 0x129   : > { %1610 = vmatpush.msra.mxu2 %v1383_v55  ;;  %1559 = vmatpush.msrb.mxu3 %v1410_v9  ;;  %v1236_v55 = vld [vmem:[%s4597_s5 + $0x90] sm:$0xff]  ;;  %v1411_v9 = vld [vmem:[%s4597_s5 + $0x608] sm:$0xff] }
 0x12a   : > { %1573 = vmatpush.msra.mxu0 %v1243_v28  ;;  %1593 = vmatpush.msra.mxu1 %v1307_v29  ;;  %v1268_v28 = vld [vmem:[%s4597_s5 + $0x190] sm:$0xff]  ;;  %v1347_v29 = vld [vmem:[%s4597_s5 + $0x408] sm:$0xff] }
 0x12b   : > { %1611 = vmatpush.msra.mxu2 %v1379_v57  ;;  %v1439_v57 = vld [vmem:[%s4597_s5 + $0x6e8] sm:$0xff]  ;;  %v1408_v25 = vld [vmem:[%s4597_s5 + $0x5f0] sm:$0xff] }
 0x12c   : > { %1574 = vmatpush.msra.mxu0 %v1239_v30  ;;  %1594 = vmatpush.msra.mxu1 %v1303_v31  ;;  %v911_v50 = vpop.f32.mrf.mxu0  ;;  %v931_v58 = vpop.f32.mrf.mxu1  ;;  %v1471_v31 = vld [vmem:[%s4597_s5 + $0x7e8] sm:$0xff] }
 0x12d   : > { %v912_v52 = vadd.f32 %v911_v50, %v886_v43  ;;  %1612 = vmatpush.msra.mxu2 %v1375_v60  ;;  %1624 = vmatpush.msra.mxu3 %v1471_v31  ;;  %v1455_v43 = vld [vmem:[%s4597_s5 + $0x768] sm:$0xff]  ;;  %v1324_v50 = vld [vmem:[%s4597_s5 + $0x350] sm:$0xff] }
 0x12e   : > { %1575 = vmatpush.msra.mxu0 %v1235_v34  ;;  %1595 = vmatpush.msra.mxu1 %v1299_v35  ;;  %v1344_v34 = vld [vmem:[%s4597_s5 + $0x3f0] sm:$0xff]  ;;  %v1435_v60 = vld [vmem:[%s4597_s5 + $0x6c8] sm:$0xff] }
 0x12f   : > { %v932_v61 = vadd.f32 %v931_v58, %v912_v52  ;;  %1613 = vmatpush.msra.mxu2 %v1371_v63  ;;  %v1260_v35 = vld [vmem:[%s4597_s5 + $0x150] sm:$0xff]  ;;  %1625 = vmatpush.msra.mxu3 %v1467_v22  ;;  %v1443_v52 = vld [vmem:[%s4597_s5 + $0x708] sm:$0xff]  ;;  %v1345_v22 = vld [vmem:[%s4597_s5 + $0x3f8] sm:$0xff] }
 0x130   : > { %1576 = vmatpush.msra.mxu0 %v1231_v39  ;;  %1596 = vmatpush.msra.mxu1 %v1295_v40  ;;  %v1256_v39 = vld [vmem:[%s4597_s5 + $0x130] sm:$0xff]  ;;  %v1459_v40 = vld [vmem:[%s4597_s5 + $0x788] sm:$0xff] }
 0x131   : > { %1614 = vmatpush.msra.mxu2 %v1367_v2  ;;  %1626 = vmatpush.msra.mxu3 %v1463_v37  ;;  %v1316_v58 = vld [vmem:[%s4597_s5 + $0x310] sm:$0xff]  ;;  %v1341_v37 = vld [vmem:[%s4597_s5 + $0x3d8] sm:$0xff] }
 0x132   : > { %1577 = vmatpush.msra.mxu0 %v1227_v44  ;;  %1597 = vmatpush.msra.mxu1 %v1291_v45  ;;  %v1332_v44 = vld [vmem:[%s4597_s5 + $0x390] sm:$0xff] }
 0x133   : > { %1615 = vmatpush.msra.mxu2 %v1363_v10  ;;  %v1248_v45 = vld [vmem:[%s4597_s5 + $0xf0] sm:$0xff]  ;;  %1627 = vmatpush.msra.mxu3 %v1459_v40  ;;  %v1337_v40 = vld [vmem:[%s4597_s5 + $0x3b8] sm:$0xff] }
 0x134   : > { %1578 = vmatpush.msra.mxu0 %v1223_v48  ;;  %1598 = vmatpush.msra.mxu1 %v1287_v49  ;;  %v1244_v48 = vld [vmem:[%s4597_s5 + $0xd0] sm:$0xff]  ;;  %v1447_v49 = vld [vmem:[%s4597_s5 + $0x728] sm:$0xff] }
 0x135   : > { %1616 = vmatpush.msra.mxu2 %v1359_v16  ;;  %1628 = vmatpush.msra.mxu3 %v1455_v43  ;;  %v1228_v63 = vld [vmem:[%s4597_s5 + $0x50] sm:$0xff]  ;;  %v1333_v43 = vld [vmem:[%s4597_s5 + $0x398] sm:$0xff] }
 0x136   : > { %1579 = vmatpush.msra.mxu0 %v1219_v51  ;;  %1599 = vmatpush.msra.mxu1 %v1283_v53  ;;  %v991_v5 = vpop.f32.mrf.mxu0  ;;  %v1240_v51 = vld [vmem:[%s4597_s5 + $0xb0] sm:$0xff]  ;;  %v888_v53 = vperm.slane %v3610_v36, 2 }
 0x137   : > { %v992_v12 = vadd.f32 %v991_v5, %v887_v3  ;;  %1617 = vmatpush.msra.mxu2 %v1355_v20  ;;  %1629 = vmatpush.msra.mxu3 %v1451_v46  ;;  %v1224_v2 = vld [vmem:[%s4597_s5 + $0x30] sm:$0xff]  ;;  %v1277_v20 = vld [vmem:[%s4597_s5 + $0x1d8] sm:$0xff] }
 0x138   : > { %v1011_v17 = vpop.f32.mrf.mxu1  ;;  %v1284_v31 = vld [vmem:[%s4597_s5 + $0x210] sm:$0xff]  ;;  %v1329_v46 = vld [vmem:[%s4597_s5 + $0x378] sm:$0xff] }
 0x139   : > { %v951_v0 = vpop.f32.mrf.mxu2  ;;  %v971_v6 = vpop.f32.mrf.mxu3  ;;  %v1012_v21 = vadd.f32 %v1011_v17, %v992_v12  ;;  %1618 = vmatpush.msra.mxu2 %v1351_v26  ;;  %1630 = vmatpush.msra.mxu3 %v1447_v49  ;;  %v1419_v17 = vld [vmem:[%s4597_s5 + $0x648] sm:$0xff]  ;;  %v1292_v26 = vld [vmem:[%s4597_s5 + $0x250] sm:$0xff]  ;;  %v1325_v49 = vld [vmem:[%s4597_s5 + $0x358] sm:$0xff] }
 0x13a   : > { %v952_v4 = vadd.f32 %v951_v0, %v932_v61  ;;  %v1431_v0 = vld [vmem:[%s4597_s5 + $0x6a8] sm:$0xff] }
 0x13b   : > { %1619 = vmatpush.msra.mxu2 %v1347_v29  ;;  %1631 = vmatpush.msra.mxu3 %v1443_v52  ;;  %v1269_v29 = vld [vmem:[%s4597_s5 + $0x198] sm:$0xff] }
 0x13c   : > { %v972_v11 = vadd.f32 %v971_v6, %v952_v4  ;;  %v1427_v4 = vld [vmem:[%s4597_s5 + $0x688] sm:$0xff]  ;;  %v1304_v6 = vld [vmem:[%s4597_s5 + $0x2b0] sm:$0xff]  ;;  %v1321_v52 = vld [vmem:[%s4597_s5 + $0x338] sm:$0xff] }
 0x13d   : > { %1632 = vmatpush.msra.mxu3 %v1439_v57  ;;  %v1317_v57 = vld [vmem:[%s4597_s5 + $0x318] sm:$0xff] }
 0x13e   : > { %v3692_v13 = vmax.f32 %v972_v11, 0.0  ;;  %v1423_v11 = vld [vmem:[%s4597_s5 + $0x668] sm:$0xff] }
 0x13f   : > { %1633 = vmatpush.msra.mxu3 %v1435_v60 }
 0x140   : > { %1500 = vmatmul.f32.vlgmr.msrb.gmra.mxu0 %v3692_v13 }
 0x141   : > { %1644 = vmatpush.msrb.mxu0 %v1280_v14  ;;  %1634 = vmatpush.msra.mxu3 %v1431_v0  ;;  %v1300_v14 = vld [vmem:[%s4597_s5 + $0x290] sm:$0xff]  ;;  %v1225_v0 = vld [vmem:[%s4597_s5 + $0x38] sm:$0xff] }
 0x143   : > { %v1031_v8 = vpop.f32.mrf.mxu2  ;;  %1645 = vmatpush.msrb.mxu0 %v1276_v18  ;;  %v1051_v30 = vpop.f32.mrf.mxu3  ;;  %1635 = vmatpush.msra.mxu3 %v1427_v4 }
 0x144   : > { %v1032_v27 = vadd.f32 %v1031_v8, %v1012_v21  ;;  %v1415_v21 = vld [vmem:[%s4597_s5 + $0x628] sm:$0xff]  ;;  %v1273_v8 = vld [vmem:[%s4597_s5 + $0x1b8] sm:$0xff] }
 0x145   : > { %1646 = vmatpush.msrb.mxu0 %v1272_v24  ;;  %1636 = vmatpush.msra.mxu3 %v1423_v11 }
 0x146   : > { %v1052_v32 = vadd.f32 %v1051_v30, %v1032_v27  ;;  %v1404_v27 = vld [vmem:[%s4597_s5 + $0x5d0] sm:$0xff] }
 0x147   : > { %1647 = vmatpush.msrb.mxu0 %v1268_v28  ;;  %1637 = vmatpush.msra.mxu3 %v1419_v17  ;;  %v1288_v28 = vld [vmem:[%s4597_s5 + $0x230] sm:$0xff]  ;;  %v1409_v17 = vld [vmem:[%s4597_s5 + $0x5f8] sm:$0xff] }
 0x148   : > { %v3740_v23 = vmax.f32 %v1052_v32, 0.0  ;;  %1580 = vmatmul.f32.vlgmr.msra.gmra.mxu0 %v3692_v13  ;;  %v1400_v30 = vld [vmem:[%s4597_s5 + $0x5b0] sm:$0xff]  ;;  %v1265_v32 = vld [vmem:[%s4597_s5 + $0x178] sm:$0xff] }
 0x149   : > { %1648 = vmatpush.msrb.mxu0 %v1264_v33  ;;  %1638 = vmatpush.msra.mxu3 %v1415_v21  ;;  %v1396_v33 = vld [vmem:[%s4597_s5 + $0x590] sm:$0xff] }
 0x14a   : > { %1520 = vmatmul.f32.vlgmr.msrb.gmra.mxu1 %v3740_v23  ;;  %v1468_v21 = vld [vmem:[%s4597_s5 + $0x7d0] sm:$0xff] }
 0x14b   : > { %1664 = vmatpush.msrb.mxu1 %v1344_v34  ;;  %1649 = vmatpush.msrb.mxu0 %v1260_v35  ;;  %v1261_v34 = vld [vmem:[%s4597_s5 + $0x158] sm:$0xff]  ;;  %v1392_v35 = vld [vmem:[%s4597_s5 + $0x570] sm:$0xff] }
 0x14c   : > { %1639 = vmatpush.msra.mxu3 %v1411_v9  ;;  %v1285_v9 = vld [vmem:[%s4597_s5 + $0x218] sm:$0xff] }
 0x14d   : > { %1665 = vmatpush.msrb.mxu1 %v1340_v38  ;;  %1650 = vmatpush.msrb.mxu0 %v1256_v39  ;;  %v1257_v38 = vld [vmem:[%s4597_s5 + $0x138] sm:$0xff]  ;;  %v1388_v39 = vld [vmem:[%s4597_s5 + $0x550] sm:$0xff] }
 0x14f   : > { %1666 = vmatpush.msrb.mxu1 %v1336_v41  ;;  %1651 = vmatpush.msrb.mxu0 %v1252_v42  ;;  %v1253_v41 = vld [vmem:[%s4597_s5 + $0x118] sm:$0xff]  ;;  %v1384_v42 = vld [vmem:[%s4597_s5 + $0x530] sm:$0xff] }
 0x150   : > { %v1071_v56 = vpop.f32.mrf.mxu0  ;;  %v1091_v3 = vpop.f32.mrf.mxu1 }
 0x151   : > { %1667 = vmatpush.msrb.mxu1 %v1332_v44  ;;  %1652 = vmatpush.msrb.mxu0 %v1248_v45  ;;  %v1072_v61 = vadd.f32 %v1071_v56, %v888_v53  ;;  %v1249_v44 = vld [vmem:[%s4597_s5 + $0xf8] sm:$0xff]  ;;  %v1380_v45 = vld [vmem:[%s4597_s5 + $0x510] sm:$0xff]  ;;  %v889_v53 = vperm.slane %v3610_v36, 3 }
 0x152   : > { %1600 = vmatmul.f32.vlgmr.msra.gmra.mxu1 %v3740_v23  ;;  %v1368_v56 = vld [vmem:[%s4597_s5 + $0x4b0] sm:$0xff]  ;;  %v1233_v36 = vld [vmem:[%s4597_s5 + $0x78] sm:$0xff] }
 0x153   : > { %1668 = vmatpush.msrb.mxu1 %v1328_v47  ;;  %1653 = vmatpush.msrb.mxu0 %v1244_v48  ;;  %v1092_v5 = vadd.f32 %v1091_v3, %v1072_v61  ;;  %v1245_v47 = vld [vmem:[%s4597_s5 + $0xd8] sm:$0xff]  ;;  %v1376_v48 = vld [vmem:[%s4597_s5 + $0x4f0] sm:$0xff] }
 0x154   : > { %v1229_v61 = vld [vmem:[%s4597_s5 + $0x58] sm:$0xff] }
 0x155   : > { %1669 = vmatpush.msrb.mxu1 %v1324_v50  ;;  %1654 = vmatpush.msrb.mxu0 %v1240_v51  ;;  %v1241_v50 = vld [vmem:[%s4597_s5 + $0xb8] sm:$0xff]  ;;  %v1372_v51 = vld [vmem:[%s4597_s5 + $0x4d0] sm:$0xff] }
 0x156   : > { %v1305_v3 = vld [vmem:[%s4597_s5 + $0x2b8] sm:$0xff] }
 0x157   : > { %1670 = vmatpush.msrb.mxu1 %v1320_v54  ;;  %1655 = vmatpush.msrb.mxu0 %v1236_v55  ;;  %v1237_v54 = vld [vmem:[%s4597_s5 + $0x98] sm:$0xff] }
 0x159   : > { %1671 = vmatpush.msrb.mxu1 %v1316_v58  ;;  %1656 = vmatpush.msrb.mxu0 %v1232_v59  ;;  %v1364_v58 = vld [vmem:[%s4597_s5 + $0x490] sm:$0xff]  ;;  %v1313_v59 = vld [vmem:[%s4597_s5 + $0x2f8] sm:$0xff] }
 0x15b   : > { %1672 = vmatpush.msrb.mxu1 %v1312_v62  ;;  %1657 = vmatpush.msrb.mxu0 %v1228_v63  ;;  %v1360_v62 = vld [vmem:[%s4597_s5 + $0x470] sm:$0xff]  ;;  %v1309_v63 = vld [vmem:[%s4597_s5 + $0x2d8] sm:$0xff] }
 0x15d   : > { %v1111_v10 = vpop.f32.mrf.mxu2  ;;  %1673 = vmatpush.msrb.mxu1 %v1308_v1  ;;  %1658 = vmatpush.msrb.mxu0 %v1224_v2  ;;  %v1131_v16 = vpop.f32.mrf.mxu3  ;;  %v1356_v2 = vld [vmem:[%s4597_s5 + $0x450] sm:$0xff] }
 0x15e   : > { %v1112_v12 = vadd.f32 %v1111_v10, %v1092_v5  ;;  %v1221_v5 = vld [vmem:[%s4597_s5 + $0x18] sm:$0xff] }
 0x15f   : > { %1674 = vmatpush.msrb.mxu1 %v1304_v6  ;;  %1659 = vmatpush.msrb.mxu0 %v1220_v7  ;;  %v1352_v7 = vld [vmem:[%s4597_s5 + $0x430] sm:$0xff]  ;;  %v1301_v10 = vld [vmem:[%s4597_s5 + $0x298] sm:$0xff] }
 0x160   : > { %v1132_v18 = vadd.f32 %v1131_v16, %v1112_v12  ;;  %1660 = vmatmul.f32.vlgmr.msrb.gmra.mxu0 %v3692_v13 }
 0x161   : > { %1675 = vmatpush.msrb.mxu1 %v1300_v14  ;;  %1724 = vmatpush.msra.mxu0 %v1281_v15  ;;  %v1348_v14 = vld [vmem:[%s4597_s5 + $0x410] sm:$0xff]  ;;  %v1297_v15 = vld [vmem:[%s4597_s5 + $0x278] sm:$0xff] }
 0x162   : > { %v3864_v24 = vmax.f32 %v1132_v18, 0.0 }
 0x163   : > { %1676 = vmatpush.msrb.mxu1 %v1296_v19  ;;  %1725 = vmatpush.msra.mxu0 %v1277_v20  ;;  %v1472_v19 = vld [vmem:[%s4597_s5 + $0x7f0] sm:$0xff]  ;;  %v1293_v20 = vld [vmem:[%s4597_s5 + $0x258] sm:$0xff] }
 0x164   : > { %1540 = vmatmul.f32.vlgmr.msrb.gmra.mxu2 %v3864_v24 }
 0x165   : > { %1684 = vmatpush.msrb.mxu2 %v1408_v25  ;;  %1677 = vmatpush.msrb.mxu1 %v1292_v26  ;;  %v1289_v25 = vld [vmem:[%s4597_s5 + $0x238] sm:$0xff] }
 0x166   : > { %1726 = vmatpush.msra.mxu0 %v1273_v8  ;;  %v1401_v26 = vld [vmem:[%s4597_s5 + $0x5b8] sm:$0xff]  ;;  %v1464_v8 = vld [vmem:[%s4597_s5 + $0x7b0] sm:$0xff] }
 0x167   : > { %1685 = vmatpush.msrb.mxu2 %v1404_v27  ;;  %1678 = vmatpush.msrb.mxu1 %v1288_v28  ;;  %v1397_v27 = vld [vmem:[%s4597_s5 + $0x598] sm:$0xff]  ;;  %v1460_v28 = vld [vmem:[%s4597_s5 + $0x790] sm:$0xff] }
 0x168   : > { %1727 = vmatpush.msra.mxu0 %v1269_v29  ;;  %v1393_v29 = vld [vmem:[%s4597_s5 + $0x578] sm:$0xff] }
 0x169   : > { %1686 = vmatpush.msrb.mxu2 %v1400_v30  ;;  %1679 = vmatpush.msrb.mxu1 %v1284_v31  ;;  %v1456_v30 = vld [vmem:[%s4597_s5 + $0x770] sm:$0xff]  ;;  %v1389_v31 = vld [vmem:[%s4597_s5 + $0x558] sm:$0xff] }
 0x16a   : > { %1680 = vmatmul.f32.vlgmr.msrb.gmra.mxu1 %v3740_v23  ;;  %1728 = vmatpush.msra.mxu0 %v1265_v32  ;;  %v1452_v32 = vld [vmem:[%s4597_s5 + $0x750] sm:$0xff] }
 0x16b   : > { %1687 = vmatpush.msrb.mxu2 %v1396_v33  ;;  %1744 = vmatpush.msra.mxu1 %v1345_v22  ;;  %v1385_v33 = vld [vmem:[%s4597_s5 + $0x538] sm:$0xff] }
 0x16c   : > { %1620 = vmatmul.f32.vlgmr.msra.gmra.mxu2 %v3864_v24  ;;  %1729 = vmatpush.msra.mxu0 %v1261_v34  ;;  %v1381_v22 = vld [vmem:[%s4597_s5 + $0x518] sm:$0xff]  ;;  %v1444_v34 = vld [vmem:[%s4597_s5 + $0x710] sm:$0xff] }
 0x16d   : > { %1688 = vmatpush.msrb.mxu2 %v1392_v35  ;;  %1745 = vmatpush.msra.mxu1 %v1341_v37  ;;  %v1377_v35 = vld [vmem:[%s4597_s5 + $0x4f8] sm:$0xff]  ;;  %v1440_v37 = vld [vmem:[%s4597_s5 + $0x6f0] sm:$0xff] }
 0x16e   : > { %1730 = vmatpush.msra.mxu0 %v1257_v38  ;;  %v1373_v38 = vld [vmem:[%s4597_s5 + $0x4d8] sm:$0xff] }
 0x16f   : > { %1689 = vmatpush.msrb.mxu2 %v1388_v39  ;;  %1746 = vmatpush.msra.mxu1 %v1337_v40  ;;  %v1436_v39 = vld [vmem:[%s4597_s5 + $0x6d0] sm:$0xff]  ;;  %v1369_v40 = vld [vmem:[%s4597_s5 + $0x4b8] sm:$0xff] }
 0x170   : > { %1731 = vmatpush.msra.mxu0 %v1253_v41  ;;  %v1432_v41 = vld [vmem:[%s4597_s5 + $0x6b0] sm:$0xff] }
 0x171   : > { %1690 = vmatpush.msrb.mxu2 %v1384_v42  ;;  %1747 = vmatpush.msra.mxu1 %v1333_v43  ;;  %v1365_v42 = vld [vmem:[%s4597_s5 + $0x498] sm:$0xff]  ;;  %v1428_v43 = vld [vmem:[%s4597_s5 + $0x690] sm:$0xff] }
 0x172   : > { %1732 = vmatpush.msra.mxu0 %v1249_v44  ;;  %v1151_v55 = vpop.f32.mrf.mxu0  ;;  %v1171_v1 = vpop.f32.mrf.mxu1  ;;  %v1361_v44 = vld [vmem:[%s4597_s5 + $0x478] sm:$0xff] }
 0x173   : > { %1691 = vmatpush.msrb.mxu2 %v1380_v45  ;;  %1748 = vmatpush.msra.mxu1 %v1329_v46  ;;  %v1152_v60 = vadd.f32 %v1151_v55, %v889_v53  ;;  %v1424_v45 = vld [vmem:[%s4597_s5 + $0x670] sm:$0xff]  ;;  %v1357_v46 = vld [vmem:[%s4597_s5 + $0x458] sm:$0xff] }
 0x174   : > { %1733 = vmatpush.msra.mxu0 %v1245_v47  ;;  %v1420_v47 = vld [vmem:[%s4597_s5 + $0x650] sm:$0xff]  ;;  %v1469_v53 = vld [vmem:[%s4597_s5 + $0x7d8] sm:$0xff] }
 0x175   : > { %1692 = vmatpush.msrb.mxu2 %v1376_v48  ;;  %1749 = vmatpush.msra.mxu1 %v1325_v49  ;;  %v1172_v4 = vadd.f32 %v1171_v1, %v1152_v60  ;;  %v1353_v48 = vld [vmem:[%s4597_s5 + $0x438] sm:$0xff]  ;;  %v1416_v49 = vld [vmem:[%s4597_s5 + $0x630] sm:$0xff] }
 0x176   : > { %1734 = vmatpush.msra.mxu0 %v1241_v50  ;;  %v1349_v50 = vld [vmem:[%s4597_s5 + $0x418] sm:$0xff] }
 0x177   : > { %1693 = vmatpush.msrb.mxu2 %v1372_v51  ;;  %1750 = vmatpush.msra.mxu1 %v1321_v52  ;;  %v1412_v51 = vld [vmem:[%s4597_s5 + $0x610] sm:$0xff]  ;;  %v1473_v52 = vld [vmem:[%s4597_s5 + $0x7f8] sm:$0xff] }
 0x178   : > { %1735 = vmatpush.msra.mxu0 %v1237_v54  ;;  %v1465_v54 = vld [vmem:[%s4597_s5 + $0x7b8] sm:$0xff] }
 0x179   : > { %1694 = vmatpush.msrb.mxu2 %v1368_v56  ;;  %1751 = vmatpush.msra.mxu1 %v1317_v57  ;;  %v1461_v55 = vld [vmem:[%s4597_s5 + $0x798] sm:$0xff] }
 0x17a   : > { %1736 = vmatpush.msra.mxu0 %v1233_v36  ;;  %v1453_v56 = vld [vmem:[%s4597_s5 + $0x758] sm:$0xff] }
 0x17b   : > { %1695 = vmatpush.msrb.mxu2 %v1364_v58  ;;  %1752 = vmatpush.msra.mxu1 %v1313_v59  ;;  %v1449_v57 = vld [vmem:[%s4597_s5 + $0x738] sm:$0xff]  ;;  %v1822_v58 = vld [vmem:[%s4599_s7 + $0x70] sm:$0xff] }
 0x17c   : > { %1737 = vmatpush.msra.mxu0 %v1229_v61  ;;  %v1823_v36 = vld [vmem:[%s4599_s7 + $0x78] sm:$0xff]  ;;  %v1821_v61 = vld [vmem:[%s4599_s7 + $0x68] sm:$0xff] }
 0x17d   : > { %1696 = vmatpush.msrb.mxu2 %v1360_v62  ;;  %1753 = vmatpush.msra.mxu1 %v1309_v63  ;;  %v1445_v59 = vld [vmem:[%s4597_s5 + $0x718] sm:$0xff]  ;;  %v1838_v62 = vld [vmem:[%s4599_s7 + $0xf0] sm:$0xff] }
 0x17e   : > { %v1191_v6 = vpop.f32.mrf.mxu2  ;;  %1738 = vmatpush.msra.mxu0 %v1225_v0  ;;  %v1211_v12 = vpop.f32.mrf.mxu3  ;;  %v1839_v60 = vld [vmem:[%s4599_s7 + $0xf8] sm:$0xff]  ;;  %v1820_v0 = vld [vmem:[%s4599_s7 + $0x60] sm:$0xff] }
 0x17f   : > { %v1192_v11 = vadd.f32 %v1191_v6, %v1172_v4  ;;  %1697 = vmatpush.msrb.mxu2 %v1356_v2  ;;  %1754 = vmatpush.msra.mxu1 %v1305_v3  ;;  %v1441_v63 = vld [vmem:[%s4597_s5 + $0x6f8] sm:$0xff]  ;;  %v1818_v4 = vld [vmem:[%s4599_s7 + $0x50] sm:$0xff] }
 0x180   : > { %1739 = vmatpush.msra.mxu0 %v1221_v5  ;;  %v1437_v1 = vld [vmem:[%s4597_s5 + $0x6d8] sm:$0xff] }
 0x181   : > { %v1212_v16 = vadd.f32 %v1211_v12, %v1192_v11  ;;  %1698 = vmatpush.msrb.mxu2 %v1352_v7  ;;  %1755 = vmatpush.msra.mxu1 %v1301_v10  ;;  %v1819_v2 = vld [vmem:[%s4599_s7 + $0x58] sm:$0xff]  ;;  %v1817_v10 = vld [vmem:[%s4599_s7 + $0x48] sm:$0xff]  ;;  %v1816_v12 = vld [vmem:[%s4599_s7 + $0x40] sm:$0xff] }
 0x182   : > { %1740 = vmatmul.f32.vlgmr.msra.gmra.mxu0 %v3692_v13  ;;  %v1405_v13 = vld [vmem:[%s4597_s5 + $0x5d8] sm:$0xff]  ;;  %v1837_v11 = vld [vmem:[%s4599_s7 + $0xe8] sm:$0xff] }
 0x183   : > { %v4015_v18 = vmax.f32 %v1212_v16, 0.0  ;;  %1699 = vmatpush.msrb.mxu2 %v1348_v14  ;;  %1756 = vmatpush.msra.mxu1 %v1297_v15  ;;  %v1433_v3 = vld [vmem:[%s4597_s5 + $0x6b8] sm:$0xff]  ;;  %v1836_v15 = vld [vmem:[%s4599_s7 + $0xe0] sm:$0xff] }
 0x184   : > { %1700 = vmatmul.f32.vlgmr.msrb.gmra.mxu2 %v3864_v24  ;;  %1873 = vmatpush.msrb.mxu0 %v1823_v36  ;;  %v1429_v5 = vld [vmem:[%s4597_s5 + $0x698] sm:$0xff]  ;;  %v1846_v36 = vld [vmem:[%s4599_s7 + $0x130] sm:$0xff] }
 0x185   : > { %1560 = vmatmul.f32.vlgmr.msrb.gmra.mxu3 %v4015_v18  ;;  %1764 = vmatpush.msra.mxu2 %v1409_v17  ;;  %v1425_v6 = vld [vmem:[%s4597_s5 + $0x678] sm:$0xff] }
 0x186   : > { %1704 = vmatpush.msrb.mxu3 %v1472_v19  ;;  %1757 = vmatpush.msra.mxu1 %v1293_v20  ;;  %v1421_v7 = vld [vmem:[%s4597_s5 + $0x658] sm:$0xff]  ;;  %v1814_v20 = vld [vmem:[%s4599_s7 + $0x30] sm:$0xff] }
 0x187   : > { %1765 = vmatpush.msra.mxu2 %v1405_v13  ;;  %1874 = vmatpush.msrb.mxu0 %v1822_v58  ;;  %v1417_v14 = vld [vmem:[%s4597_s5 + $0x638] sm:$0xff]  ;;  %v1834_v13 = vld [vmem:[%s4599_s7 + $0xd0] sm:$0xff] }
 0x188   : > { %1705 = vmatpush.msrb.mxu3 %v1468_v21  ;;  %1758 = vmatpush.msra.mxu1 %v1289_v25  ;;  %v1815_v16 = vld [vmem:[%s4599_s7 + $0x38] sm:$0xff]  ;;  %v1813_v21 = vld [vmem:[%s4599_s7 + $0x28] sm:$0xff]  ;;  %v1961_v58 = vld [vmem:[%s4601_s9 + $0x30] sm:$0xff] }
 0x189   : > { %1766 = vmatpush.msra.mxu2 %v1401_v26  ;;  %1875 = vmatpush.msrb.mxu0 %v1821_v61  ;;  %v1835_v17 = vld [vmem:[%s4599_s7 + $0xd8] sm:$0xff]  ;;  %v1833_v25 = vld [vmem:[%s4599_s7 + $0xc8] sm:$0xff]  ;;  %v1832_v26 = vld [vmem:[%s4599_s7 + $0xc0] sm:$0xff] }
 0x18a   : > { %1706 = vmatpush.msrb.mxu3 %v1464_v8  ;;  %1759 = vmatpush.msra.mxu1 %v1285_v9  ;;  %v1413_v19 = vld [vmem:[%s4597_s5 + $0x618] sm:$0xff]  ;;  %v1960_v61 = vld [vmem:[%s4601_s9 + $0x28] sm:$0xff] }
 0x18b   : > { %1767 = vmatpush.msra.mxu2 %v1397_v27  ;;  %1760 = vmatmul.f32.vlgmr.msra.gmra.mxu1 %v3740_v23  ;;  %v1448_v23 = vld [vmem:[%s4597_s5 + $0x730] sm:$0xff]  ;;  %v1811_v8 = vld [vmem:[%s4599_s7 + $0x18] sm:$0xff] }
 0x18c   : > { %1707 = vmatpush.msrb.mxu3 %v1460_v28  ;;  %1893 = vmatpush.msrb.mxu1 %v1839_v60  ;;  %v1831_v9 = vld [vmem:[%s4599_s7 + $0xb8] sm:$0xff]  ;;  %v1810_v27 = vld [vmem:[%s4599_s7 + $0x10] sm:$0xff]  ;;  %v1845_v60 = vld [vmem:[%s4599_s7 + $0x128] sm:$0xff] }
 0x18d   : > { %1640 = vmatmul.f32.vlgmr.msra.gmra.mxu3 %v4015_v18  ;;  %1768 = vmatpush.msra.mxu2 %v1393_v29  ;;  %v1830_v28 = vld [vmem:[%s4599_s7 + $0xb0] sm:$0xff]  ;;  %v1809_v29 = vld [vmem:[%s4599_s7 + $0x8] sm:$0xff] }
 0x18e   : > { %1708 = vmatpush.msrb.mxu3 %v1456_v30  ;;  %1894 = vmatpush.msrb.mxu1 %v1838_v62  ;;  %v1829_v30 = vld [vmem:[%s4599_s7 + $0xa8] sm:$0xff] }
 0x18f   : > { %1769 = vmatpush.msra.mxu2 %v1389_v31  ;;  %1876 = vmatpush.msrb.mxu0 %v1820_v0  ;;  %v1808_v31 = vld [vmem:[%s4599_s7] sm:$0xff]  ;;  %v1980_v62 = vld [vmem:[%s4601_s9 + $0xc8] sm:$0xff] }
 0x190   : > { %1709 = vmatpush.msrb.mxu3 %v1452_v32  ;;  %1895 = vmatpush.msrb.mxu1 %v1837_v11  ;;  %v1828_v32 = vld [vmem:[%s4599_s7 + $0xa0] sm:$0xff]  ;;  %v1956_v11 = vld [vmem:[%s4601_s9 + $0x8] sm:$0xff] }
 0x191   : > { %1770 = vmatpush.msra.mxu2 %v1385_v33  ;;  %1877 = vmatpush.msrb.mxu0 %v1819_v2  ;;  %v1855_v33 = vld [vmem:[%s4599_s7 + $0x178] sm:$0xff]  ;;  %v1959_v0 = vld [vmem:[%s4601_s9 + $0x20] sm:$0xff] }
 0x192   : > { %1710 = vmatpush.msrb.mxu3 %v1448_v23  ;;  %1896 = vmatpush.msrb.mxu1 %v1836_v15  ;;  %v1970_v23 = vld [vmem:[%s4601_s9 + $0x78] sm:$0xff]  ;;  %v1955_v15 = vld [vmem:[%s4601_s9] sm:$0xff] }
 0x193   : > { %1771 = vmatpush.msra.mxu2 %v1381_v22  ;;  %1878 = vmatpush.msrb.mxu0 %v1818_v4  ;;  %v1854_v22 = vld [vmem:[%s4599_s7 + $0x170] sm:$0xff]  ;;  %v1843_v2 = vld [vmem:[%s4599_s7 + $0x118] sm:$0xff] }
 0x194   : > { %1711 = vmatpush.msrb.mxu3 %v1444_v34  ;;  %1897 = vmatpush.msrb.mxu1 %v1835_v17  ;;  %v1827_v34 = vld [vmem:[%s4599_s7 + $0x98] sm:$0xff] }
 0x195   : > { %1772 = vmatpush.msra.mxu2 %v1377_v35  ;;  %1879 = vmatpush.msrb.mxu0 %v1817_v10  ;;  %v1969_v35 = vld [vmem:[%s4601_s9 + $0x70] sm:$0xff]  ;;  %v1978_v4 = vld [vmem:[%s4601_s9 + $0xb8] sm:$0xff]  ;;  %v1841_v10 = vld [vmem:[%s4599_s7 + $0x108] sm:$0xff] }
 0x196   : > { %1712 = vmatpush.msrb.mxu3 %v1440_v37  ;;  %1898 = vmatpush.msrb.mxu1 %v1834_v13  ;;  %v1853_v37 = vld [vmem:[%s4599_s7 + $0x168] sm:$0xff]  ;;  %v1871_v17 = vld [vmem:[%s4599_s7 + $0x1f8] sm:$0xff]  ;;  %v1870_v13 = vld [vmem:[%s4599_s7 + $0x1f0] sm:$0xff] }
 0x197   : > { %1773 = vmatpush.msra.mxu2 %v1373_v38  ;;  %1880 = vmatpush.msrb.mxu0 %v1816_v12  ;;  %v1826_v38 = vld [vmem:[%s4599_s7 + $0x90] sm:$0xff]  ;;  %v1976_v12 = vld [vmem:[%s4601_s9 + $0xa8] sm:$0xff] }
 0x198   : > { %1713 = vmatpush.msrb.mxu3 %v1436_v39  ;;  %1899 = vmatpush.msrb.mxu1 %v1833_v25  ;;  %v1968_v39 = vld [vmem:[%s4601_s9 + $0x68] sm:$0xff]  ;;  %v1973_v25 = vld [vmem:[%s4601_s9 + $0x90] sm:$0xff] }
 0x199   : > { %1774 = vmatpush.msra.mxu2 %v1369_v40  ;;  %1881 = vmatpush.msrb.mxu0 %v1815_v16  ;;  %v1852_v40 = vld [vmem:[%s4599_s7 + $0x160] sm:$0xff] }
 0x19a   : > { %1714 = vmatpush.msrb.mxu3 %v1432_v41  ;;  %1900 = vmatpush.msrb.mxu1 %v1832_v26  ;;  %v1825_v41 = vld [vmem:[%s4599_s7 + $0x88] sm:$0xff]  ;;  %v1975_v16 = vld [vmem:[%s4601_s9 + $0xa0] sm:$0xff] }
 0x19b   : > { %1775 = vmatpush.msra.mxu2 %v1365_v42  ;;  %1882 = vmatpush.msrb.mxu0 %v1814_v20  ;;  %v1967_v42 = vld [vmem:[%s4601_s9 + $0x60] sm:$0xff]  ;;  %v1974_v20 = vld [vmem:[%s4601_s9 + $0x98] sm:$0xff]  ;;  %v2000_v26 = vld [vmem:[%s4601_s9 + $0x168] sm:$0xff] }
 0x19c   : > { %1715 = vmatpush.msrb.mxu3 %v1428_v43  ;;  %1901 = vmatpush.msrb.mxu1 %v1831_v9  ;;  %v1851_v43 = vld [vmem:[%s4599_s7 + $0x158] sm:$0xff]  ;;  %v1868_v9 = vld [vmem:[%s4599_s7 + $0x1e0] sm:$0xff] }
 0x19d   : > { %1776 = vmatpush.msra.mxu2 %v1361_v44  ;;  %1883 = vmatpush.msrb.mxu0 %v1813_v21  ;;  %v1824_v44 = vld [vmem:[%s4599_s7 + $0x80] sm:$0xff]  ;;  %v2001_v21 = vld [vmem:[%s4601_s9 + $0x170] sm:$0xff] }
 0x19e   : > { %1716 = vmatpush.msrb.mxu3 %v1424_v45  ;;  %1902 = vmatpush.msrb.mxu1 %v1830_v28  ;;  %v1966_v45 = vld [vmem:[%s4601_s9 + $0x58] sm:$0xff]  ;;  %v4438_v28 = vld [vmem:[%s4598_s6] sm:$0xf] }
 0x19f   : > { %1777 = vmatpush.msra.mxu2 %v1357_v46  ;;  %v1986_v46 = vld [vmem:[%s4601_s9 + $0xf8] sm:$0xff] }
 0x1a0   : > { %1717 = vmatpush.msrb.mxu3 %v1420_v47  ;;  %1903 = vmatpush.msrb.mxu1 %v1829_v30  ;;  %v1850_v47 = vld [vmem:[%s4599_s7 + $0x150] sm:$0xff]  ;;  %v1867_v30 = vld [vmem:[%s4599_s7 + $0x1d8] sm:$0xff] }
 0x1a1   : > { %1778 = vmatpush.msra.mxu2 %v1353_v48  ;;  %v1965_v48 = vld [vmem:[%s4601_s9 + $0x50] sm:$0xff] }
 0x1a2   : > { %1718 = vmatpush.msrb.mxu3 %v1416_v49  ;;  %1904 = vmatpush.msrb.mxu1 %v1828_v32  ;;  %v1985_v49 = vld [vmem:[%s4601_s9 + $0xf0] sm:$0xff] }
 0x1a3   : > { %1779 = vmatpush.msra.mxu2 %v1349_v50  ;;  %v1849_v50 = vld [vmem:[%s4599_s7 + $0x148] sm:$0xff] }
 0x1a4   : > { %1719 = vmatpush.msrb.mxu3 %v1412_v51  ;;  %1780 = vmatmul.f32.vlgmr.msra.gmra.mxu2 %v3864_v24  ;;  %v1457_v24 = vld [vmem:[%s4597_s5 + $0x778] sm:$0xff]  ;;  %v1964_v51 = vld [vmem:[%s4601_s9 + $0x48] sm:$0xff] }
 0x1a5   : > { %1720 = vmatmul.f32.vlgmr.msrb.gmra.mxu3 %v4015_v18  ;;  %1913 = vmatpush.msrb.mxu2 %v1855_v33  ;;  %v1866_v33 = vld [vmem:[%s4599_s7 + $0x1d0] sm:$0xff] }
 0x1a6   : > { %1784 = vmatpush.msra.mxu3 %v1473_v52  ;;  %1905 = vmatpush.msrb.mxu1 %v1827_v34  ;;  %v1984_v52 = vld [vmem:[%s4601_s9 + $0xe8] sm:$0xff] }
 0x1a7   : > { %1914 = vmatpush.msrb.mxu2 %v1854_v22  ;;  %v1997_v22 = vld [vmem:[%s4601_s9 + $0x150] sm:$0xff] }
 0x1a8   : > { %1785 = vmatpush.msra.mxu3 %v1469_v53  ;;  %1906 = vmatpush.msrb.mxu1 %v1826_v38  ;;  %v1848_v53 = vld [vmem:[%s4599_s7 + $0x140] sm:$0xff] }
 0x1a9   : > { %1915 = vmatpush.msrb.mxu2 %v1853_v37  ;;  %v1996_v37 = vld [vmem:[%s4601_s9 + $0x148] sm:$0xff] }
 0x1aa   : > { %1786 = vmatpush.msra.mxu3 %v1465_v54  ;;  %1907 = vmatpush.msrb.mxu1 %v1825_v41  ;;  %v1963_v54 = vld [vmem:[%s4601_s9 + $0x40] sm:$0xff] }
 0x1ab   : > { %1916 = vmatpush.msrb.mxu2 %v1852_v40  ;;  %v1995_v41 = vld [vmem:[%s4601_s9 + $0x140] sm:$0xff] }
 0x1ac   : > { %1787 = vmatpush.msra.mxu3 %v1461_v55  ;;  %1908 = vmatpush.msrb.mxu1 %v1824_v44  ;;  %v1983_v55 = vld [vmem:[%s4601_s9 + $0xe0] sm:$0xff]  ;;  %v1994_v44 = vld [vmem:[%s4601_s9 + $0x138] sm:$0xff] }
 0x1ad   : > { %1917 = vmatpush.msrb.mxu2 %v1851_v43 }
 0x1ae   : > { %1788 = vmatpush.msra.mxu3 %v1457_v24  ;;  %2040 = vmatpush.msra.mxu1 %v1986_v46  ;;  %v1847_v24 = vld [vmem:[%s4599_s7 + $0x138] sm:$0xff] }
 0x1af   : > { %1918 = vmatpush.msrb.mxu2 %v1850_v47 }
 0x1b0   : > { %1789 = vmatpush.msra.mxu3 %v1453_v56  ;;  %2041 = vmatpush.msra.mxu1 %v1985_v49  ;;  %v1962_v56 = vld [vmem:[%s4601_s9 + $0x38] sm:$0xff]  ;;  %v1862_v49 = vld [vmem:[%s4599_s7 + $0x1b0] sm:$0xff] }
 0x1b1   : > { %1919 = vmatpush.msrb.mxu2 %v1849_v50  ;;  %v1993_v50 = vld [vmem:[%s4601_s9 + $0x130] sm:$0xff] }
 0x1b2   : > { %1790 = vmatpush.msra.mxu3 %v1449_v57  ;;  %2042 = vmatpush.msra.mxu1 %v1984_v52  ;;  %v1982_v57 = vld [vmem:[%s4601_s9 + $0xd8] sm:$0xff] }
 0x1b3   : > { %1920 = vmatpush.msrb.mxu2 %v1848_v53  ;;  %v1861_v53 = vld [vmem:[%s4599_s7 + $0x1a8] sm:$0xff] }
 0x1b4   : > { %1791 = vmatpush.msra.mxu3 %v1445_v59  ;;  %2043 = vmatpush.msra.mxu1 %v1983_v55  ;;  %v1981_v59 = vld [vmem:[%s4601_s9 + $0xd0] sm:$0xff] }
 0x1b5   : > { %1921 = vmatpush.msrb.mxu2 %v1847_v24 }
 0x1b6   : > { %1792 = vmatpush.msra.mxu3 %v1441_v63  ;;  %2044 = vmatpush.msra.mxu1 %v1982_v57  ;;  %v1844_v63 = vld [vmem:[%s4599_s7 + $0x120] sm:$0xff] }
 0x1b7   : > { %1922 = vmatpush.msrb.mxu2 %v1846_v36  ;;  %v1991_v57 = vld [vmem:[%s4601_s9 + $0x120] sm:$0xff] }
 0x1b8   : > { %1793 = vmatpush.msra.mxu3 %v1437_v1  ;;  %2045 = vmatpush.msra.mxu1 %v1981_v59  ;;  %v1979_v1 = vld [vmem:[%s4601_s9 + $0xc0] sm:$0xff]  ;;  %v1859_v59 = vld [vmem:[%s4599_s7 + $0x198] sm:$0xff] }
 0x1b9   : > { %1923 = vmatpush.msrb.mxu2 %v1845_v60  ;;  %v1990_v60 = vld [vmem:[%s4601_s9 + $0x118] sm:$0xff] }
 0x1ba   : > { %1794 = vmatpush.msra.mxu3 %v1433_v3  ;;  %2046 = vmatpush.msra.mxu1 %v1980_v62  ;;  %v1958_v3 = vld [vmem:[%s4601_s9 + $0x18] sm:$0xff] }
 0x1bb   : > { %1924 = vmatpush.msrb.mxu2 %v1844_v63  ;;  %v1989_v63 = vld [vmem:[%s4601_s9 + $0x110] sm:$0xff] }
 0x1bc   : > { %1795 = vmatpush.msra.mxu3 %v1429_v5  ;;  %2047 = vmatpush.msra.mxu1 %v1979_v1  ;;  %v1842_v5 = vld [vmem:[%s4599_s7 + $0x110] sm:$0xff]  ;;  %v1857_v1 = vld [vmem:[%s4599_s7 + $0x188] sm:$0xff] }
 0x1bd   : > { %1925 = vmatpush.msrb.mxu2 %v1843_v2  ;;  %v1501_v32 = vpop.f32.mrf.mxu0 }
 0x1be   : > { %1796 = vmatpush.msra.mxu3 %v1425_v6  ;;  %2048 = vmatpush.msra.mxu1 %v1978_v4  ;;  %v1957_v6 = vld [vmem:[%s4601_s9 + $0x10] sm:$0xff] }
 0x1bf   : > { %1926 = vmatpush.msrb.mxu2 %v1842_v5  ;;  %v1856_v5 = vld [vmem:[%s4599_s7 + $0x180] sm:$0xff] }
 0x1c0   : > { %1797 = vmatpush.msra.mxu3 %v1421_v7  ;;  %v1977_v7 = vld [vmem:[%s4601_s9 + $0xb0] sm:$0xff] }
 0x1c1   : > { %2049 = vmatpush.msra.mxu1 %v1977_v7  ;;  %1927 = vmatpush.msrb.mxu2 %v1841_v10  ;;  %v2018_v7 = vld [vmem:[%s4601_s9 + $0x1f8] sm:$0xff]  ;;  %v2017_v10 = vld [vmem:[%s4601_s9 + $0x1f0] sm:$0xff] }
 0x1c2   : > { %1798 = vmatpush.msra.mxu3 %v1417_v14  ;;  %v1840_v14 = vld [vmem:[%s4599_s7 + $0x100] sm:$0xff] }
 0x1c3   : > { %2050 = vmatpush.msra.mxu1 %v1976_v12  ;;  %1928 = vmatpush.msrb.mxu2 %v1840_v14  ;;  %v2015_v12 = vld [vmem:[%s4601_s9 + $0x1e0] sm:$0xff]  ;;  %v2014_v14 = vld [vmem:[%s4601_s9 + $0x1d8] sm:$0xff] }
 0x1c4   : > { %1799 = vmatpush.msra.mxu3 %v1413_v19  ;;  %v2002_v19 = vld [vmem:[%s4601_s9 + $0x178] sm:$0xff] }
 0x1c5   : > { %1800 = vmatmul.f32.vlgmr.msra.gmra.mxu3 %v4015_v18  ;;  %v1812_v18 = vld [vmem:[%s4599_s7 + $0x20] sm:$0xff]  ;;  %2051 = vmatpush.msra.mxu1 %v1975_v16  ;;  %v1581_v47 = vpop.f32.mrf.mxu0  ;;  %v1478_v16 = vperm.slane %v4438_v28, 2 }
 0x1c6   : > { %1884 = vmatpush.msrb.mxu0 %v1812_v18  ;;  %1933 = vmatpush.msrb.mxu3 %v1871_v17  ;;  %v1869_v18 = vld [vmem:[%s4599_s7 + $0x1e8] sm:$0xff] }
 0x1c7   : > { %2060 = vmatpush.msra.mxu2 %v2002_v19  ;;  %2052 = vmatpush.msra.mxu1 %v1974_v20  ;;  %v1521_v34 = vpop.f32.mrf.mxu1  ;;  %v2012_v19 = vld [vmem:[%s4601_s9 + $0x1c8] sm:$0xff] }
 0x1c8   : > { %1885 = vmatpush.msrb.mxu0 %v1811_v8  ;;  %1934 = vmatpush.msrb.mxu3 %v1870_v13  ;;  %v1972_v8 = vld [vmem:[%s4601_s9 + $0x88] sm:$0xff]  ;;  %v2011_v13 = vld [vmem:[%s4601_s9 + $0x1c0] sm:$0xff] }
 0x1c9   : > { %2061 = vmatpush.msra.mxu2 %v2001_v21  ;;  %2053 = vmatpush.msra.mxu1 %v1973_v25 }
 0x1ca   : > { %1886 = vmatpush.msrb.mxu0 %v1810_v27  ;;  %1935 = vmatpush.msrb.mxu3 %v1869_v18  ;;  %v1999_v27 = vld [vmem:[%s4601_s9 + $0x160] sm:$0xff]  ;;  %v2010_v18 = vld [vmem:[%s4601_s9 + $0x1b8] sm:$0xff] }
 0x1cb   : > { %2062 = vmatpush.msra.mxu2 %v2000_v26  ;;  %2054 = vmatpush.msra.mxu1 %v1972_v8 }
 0x1cc   : > { %1887 = vmatpush.msrb.mxu0 %v1809_v29  ;;  %v1971_v29 = vld [vmem:[%s4601_s9 + $0x80] sm:$0xff]  ;;  %1936 = vmatpush.msrb.mxu3 %v1868_v9  ;;  %v2009_v9 = vld [vmem:[%s4601_s9 + $0x1b0] sm:$0xff] }
 0x1cd   : > { %2063 = vmatpush.msra.mxu2 %v1999_v27  ;;  %2055 = vmatpush.msra.mxu1 %v1971_v29 }
 0x1ce   : > { %1888 = vmatpush.msrb.mxu0 %v1808_v31  ;;  %v1998_v31 = vld [vmem:[%s4601_s9 + $0x158] sm:$0xff]  ;;  %1937 = vmatpush.msrb.mxu3 %v1867_v30  ;;  %v2008_v30 = vld [vmem:[%s4601_s9 + $0x1a8] sm:$0xff] }
 0x1cf   : > { %2064 = vmatpush.msra.mxu2 %v1998_v31  ;;  %v1601_v52 = vpop.f32.mrf.mxu1 }
 0x1d0   : > { %2020 = vmatpush.msra.mxu0 %v1970_v23  ;;  %v1476_v23 = vperm.slane %v4438_v28, 0  ;;  %1938 = vmatpush.msrb.mxu3 %v1866_v33  ;;  %v2006_v33 = vld [vmem:[%s4601_s9 + $0x198] sm:$0xff] }
 0x1d1   : > { %2065 = vmatpush.msra.mxu2 %v1997_v22  ;;  %v2004_v22 = vld [vmem:[%s4601_s9 + $0x188] sm:$0xff] }
 0x1d2   : > { %2021 = vmatpush.msra.mxu0 %v1969_v35  ;;  %v1865_v35 = vld [vmem:[%s4599_s7 + $0x1c8] sm:$0xff]  ;;  %v1502_v40 = vadd.f32 %v1501_v32, %v1476_v23  ;;  %v2007_v32 = vld [vmem:[%s4601_s9 + $0x1a0] sm:$0xff]  ;;  %v2005_v23 = vld [vmem:[%s4601_s9 + $0x190] sm:$0xff] }
 0x1d3   : > { %1939 = vmatpush.msrb.mxu3 %v1865_v35  ;;  %2066 = vmatpush.msra.mxu2 %v1996_v37  ;;  %v1479_v35 = vperm.slane %v4438_v28, 3 }
 0x1d4   : > { %2022 = vmatpush.msra.mxu0 %v1968_v39  ;;  %v1864_v39 = vld [vmem:[%s4599_s7 + $0x1c0] sm:$0xff]  ;;  %v1522_v43 = vadd.f32 %v1521_v34, %v1502_v40 }
 0x1d5   : > { %1940 = vmatpush.msrb.mxu3 %v1864_v39  ;;  %2067 = vmatpush.msra.mxu2 %v1995_v41  ;;  %v2003_v34 = vld [vmem:[%s4601_s9 + $0x180] sm:$0xff] }
 0x1d6   : > { %2023 = vmatpush.msra.mxu0 %v1967_v42  ;;  %v1863_v42 = vld [vmem:[%s4599_s7 + $0x1b8] sm:$0xff] }
 0x1d7   : > { %1941 = vmatpush.msrb.mxu3 %v1863_v42  ;;  %2068 = vmatpush.msra.mxu2 %v1994_v44 }
 0x1d8   : > { %2024 = vmatpush.msra.mxu0 %v1966_v45  ;;  %v1477_v45 = vperm.slane %v4438_v28, 1 }
 0x1d9   : > { %1942 = vmatpush.msrb.mxu3 %v1862_v49  ;;  %2069 = vmatpush.msra.mxu2 %v1993_v50 }
 0x1da   : > { %2025 = vmatpush.msra.mxu0 %v1965_v48  ;;  %v1582_v55 = vadd.f32 %v1581_v47, %v1477_v45  ;;  %v1872_v47 = vld [vmem:[%s4600_s8] sm:$0x1] }
 0x1db   : > { %1943 = vmatpush.msrb.mxu3 %v1861_v53 }
 0x1dc   : > { %2026 = vmatpush.msra.mxu0 %v1964_v51 }
 0x1dd   : > { %v1661_v17 = vpop.f32.mrf.mxu0 }
 0x1de   : > { %2027 = vmatpush.msra.mxu0 %v1963_v54  ;;  %v1992_v54 = vld [vmem:[%s4601_s9 + $0x128] sm:$0xff]  ;;  %v1662_v21 = vadd.f32 %v1661_v17, %v1478_v16 }
 0x1df   : > { %2070 = vmatpush.msra.mxu2 %v1992_v54 }
 0x1e0   : > { %2028 = vmatpush.msra.mxu0 %v1962_v56  ;;  %v1860_v56 = vld [vmem:[%s4599_s7 + $0x1a0] sm:$0xff] }
 0x1e1   : > { %1944 = vmatpush.msrb.mxu3 %v1860_v56  ;;  %2071 = vmatpush.msra.mxu2 %v1991_v57 }
 0x1e2   : > { %2029 = vmatpush.msra.mxu0 %v1961_v58  ;;  %v1602_v58 = vadd.f32 %v1601_v52, %v1582_v55  ;;  %v2019_v52 = vld [vmem:[%s4602_s10] sm:$0x1] }
 0x1e3   : > { %1945 = vmatpush.msrb.mxu3 %v1859_v59  ;;  %2072 = vmatpush.msra.mxu2 %v1990_v60 }
 0x1e4   : > { %2030 = vmatpush.msra.mxu0 %v1960_v61  ;;  %v1858_v61 = vld [vmem:[%s4599_s7 + $0x190] sm:$0xff] }
 0x1e5   : > { %1946 = vmatpush.msrb.mxu3 %v1858_v61  ;;  %2073 = vmatpush.msra.mxu2 %v1989_v63 }
 0x1e6   : > { %2031 = vmatpush.msra.mxu0 %v1959_v0 }
 0x1e7   : > { %v1541_v38 = vpop.f32.mrf.mxu2  ;;  %1947 = vmatpush.msrb.mxu3 %v1857_v1  ;;  %v1681_v20 = vpop.f32.mrf.mxu1 }
 0x1e8   : > { %2032 = vmatpush.msra.mxu0 %v1958_v3  ;;  %v1542_v46 = vadd.f32 %v1541_v38, %v1522_v43  ;;  %v1988_v3 = vld [vmem:[%s4601_s9 + $0x108] sm:$0xff]  ;;  %v1682_v26 = vadd.f32 %v1681_v20, %v1662_v21 }
 0x1e9   : > { %2074 = vmatpush.msra.mxu2 %v1988_v3  ;;  %1948 = vmatpush.msrb.mxu3 %v1856_v5 }
 0x1ea   : > { %2033 = vmatpush.msra.mxu0 %v1957_v6  ;;  %v1987_v6 = vld [vmem:[%s4601_s9 + $0x100] sm:$0xff] }
 0x1eb   : > { %2075 = vmatpush.msra.mxu2 %v1987_v6  ;;  %2080 = vmatpush.msra.mxu3 %v2018_v7 }
 0x1ec   : > { %2034 = vmatpush.msra.mxu0 %v1956_v11  ;;  %v2016_v11 = vld [vmem:[%s4601_s9 + $0x1e8] sm:$0xff] }
 0x1ed   : > { %2081 = vmatpush.msra.mxu3 %v2017_v10 }
 0x1ee   : > { %2035 = vmatpush.msra.mxu0 %v1955_v15  ;;  %v2013_v15 = vld [vmem:[%s4601_s9 + $0x1d0] sm:$0xff] }
 0x1ef   : > { %v1621_v36 = vpop.f32.mrf.mxu2  ;;  %2082 = vmatpush.msra.mxu3 %v2016_v11 }
 0x1f0   : > { %v1622_v62 = vadd.f32 %v1621_v36, %v1602_v58 }
 0x1f1   : > { %2083 = vmatpush.msra.mxu3 %v2015_v12 }
 0x1f3   : > { %2084 = vmatpush.msra.mxu3 %v2014_v14 }
 0x1f5   : > { %2085 = vmatpush.msra.mxu3 %v2013_v15 }
 0x1f7   : > { %2086 = vmatpush.msra.mxu3 %v2012_v19 }
 0x1f9   : > { %2087 = vmatpush.msra.mxu3 %v2011_v13 }
 0x1fb   : > { %2088 = vmatpush.msra.mxu3 %v2010_v18 }
 0x1fd   : > { %2089 = vmatpush.msra.mxu3 %v2009_v9 }
 0x1ff   : > { %2090 = vmatpush.msra.mxu3 %v2008_v30  ;;  %v1741_v37 = vpop.f32.mrf.mxu0 }
 0x200   : > { %v1742_v39 = vadd.f32 %v1741_v37, %v1479_v35 }
 0x201   : > { %2091 = vmatpush.msra.mxu3 %v2007_v32 }
 0x203   : > { %2092 = vmatpush.msra.mxu3 %v2006_v33 }
 0x205   : > { %2093 = vmatpush.msra.mxu3 %v2005_v23 }
 0x207   : > { %v1701_v25 = vpop.f32.mrf.mxu2  ;;  %2094 = vmatpush.msra.mxu3 %v2004_v22 }
 0x208   : > { %v1561_v48 = vpop.f32.mrf.mxu3  ;;  %v1702_v8 = vadd.f32 %v1701_v25, %v1682_v26  ;;  %v1761_v38 = vpop.f32.mrf.mxu1 }
 0x209   : > { %v1562_v51 = vadd.f32 %v1561_v48, %v1542_v46  ;;  %2095 = vmatpush.msra.mxu3 %v2003_v34  ;;  %v1762_v41 = vadd.f32 %v1761_v38, %v1742_v39 }
 0x20b   : > { %v1804_v24 = vmax.f32 %v1562_v51, 0.0 }
 0x20d   : > { %1889 = vmatmul.f32.vlgmr.msrb.gmra.mxu0 %v1804_v24 }
 0x210   : > { %v1641_v0 = vpop.f32.mrf.mxu3 }
 0x211   : > { %v1642_v2 = vadd.f32 %v1641_v0, %v1622_v62 }
 0x213   : > { %v1805_v4 = vmax.f32 %v1642_v2, 0.0 }
 0x215   : > { %1909 = vmatmul.f32.vlgmr.msrb.gmra.mxu1 %v1805_v4  ;;  %2036 = vmatmul.f32.vlgmr.msra.gmra.mxu0 %v1804_v24 }
 0x21d   : > { %2056 = vmatmul.f32.vlgmr.msra.gmra.mxu1 %v1805_v4 }
 0x227   : > { %v1781_v40 = vpop.f32.mrf.mxu2 }
 0x228   : > { %v1721_v27 = vpop.f32.mrf.mxu3  ;;  %v1782_v42 = vadd.f32 %v1781_v40, %v1762_v41 }
 0x229   : > { %v1722_v29 = vadd.f32 %v1721_v27, %v1702_v8 }
 0x22b   : > { %v1806_v31 = vmax.f32 %v1722_v29, 0.0 }
 0x22d   : > { %1929 = vmatmul.f32.vlgmr.msrb.gmra.mxu2 %v1806_v31 }
 0x235   : > { %2076 = vmatmul.f32.vlgmr.msra.gmra.mxu2 %v1806_v31 }
 0x248   : > { %v1801_v43 = vpop.f32.mrf.mxu3 }
 0x249   : > { %v1802_v44 = vadd.f32 %v1801_v43, %v1782_v42 }
 0x24b   : > { %v1807_v45 = vmax.f32 %v1802_v44, 0.0 }
 0x24d   : > { %1949 = vmatmul.f32.vlgmr.msrb.gmra.mxu3 %v1807_v45 }
 0x255   : > { %2096 = vmatmul.f32.vlgmr.msra.gmra.mxu3 %v1807_v45 }
 0x28a   : > { %v1890_v46 = vpop.f32.mrf.mxu0 }
 0x28b   : > { %v1891_v28 = vadd.f32 %v1890_v46, %v1872_v47 }
 0x292   : > { %v1910_v48 = vpop.f32.mrf.mxu1  ;;  %v2037_v53 = vpop.f32.mrf.mxu0 }
 0x293   : > { %v1911_v50 = vadd.f32 %v1910_v48, %v1891_v28  ;;  %v2038_v56 = vadd.f32 %v2037_v53, %v2019_v52 }
 0x29a   : > { %v2057_v24 = vpop.f32.mrf.mxu1 }
 0x29b   : > { %v2058_v36 = vadd.f32 %v2057_v24, %v2038_v56 }
 0x2b0   : > { %v1930_v49 = vpop.f32.mrf.mxu2 }
 0x2b1   : > { %v1931_v51 = vadd.f32 %v1930_v49, %v1911_v50 }
 0x2b8   : > { %v2077_v57 = vpop.f32.mrf.mxu2 }
 0x2b9   : > { %v2078_v58 = vadd.f32 %v2077_v57, %v2058_v36 }
 0x2d0   : > { %v1950_v54 = vpop.f32.mrf.mxu3 }
 0x2d1   : > { %v1951_v55 = vadd.f32 %v1950_v54, %v1931_v51 }
 0x2d3   : > { %1954 = vst.msk [vmem:[%s462_s19] sm:$0x1] %vm1953_vm0, %v1951_v55 }
 0x2d8   : > { %v2097_v59 = vpop.f32.mrf.mxu3 }
 0x2d9   : > { %v2098_v60 = vadd.f32 %v2097_v59, %v2078_v58 }
 0x2db   : > { %v2101_v61 = vand.u32 2147483647, %v2098_v60  ;;  %v2100_v10 = vmax.f32 %v2098_v60, 0.0 }
 0x2dd   : > { %v2102_v62 = vsub.f32 0.0, %v2101_v61 }
 0x2df   : > { %v2103_v63 = vmul.f32 1.442695, %v2102_v62 }
 0x2e1   : > { %2262 = vpow2.f32 %v2103_v63 }
 0x2e7   : > { %v2263_v0 = vpop.eup %2262 }
 0x2e8   : > { %v2105_v1 = vadd.f32 1.0, %v2263_v0  ;;  %v2108_v2 = vmul.f32 -0.5, %v2263_v0  ;;  %v2111_v4 = vand.u32 2147483647, %v2263_v0 }
 0x2ea   : > { %2264 = vlog2.f32 %v2105_v1  ;;  %v2109_v3 = vadd.f32 1.0, %v2108_v2  ;;  %vm2112_vm1 = vcmp.lt.f32.partialorder %v2111_v4, 0.0004427343 }
 0x2ec   : > { %v2110_v7 = vmul.f32 %v2263_v0, %v2109_v3 }
 0x2f0   : > { %v2265_v5 = vpop.eup %2264 }
 0x2f1   : > { %v2107_v6 = vmul.f32 0.6931472, %v2265_v5 }
 0x2f3   : > { %v2113_v11 = vsel %vm2112_vm1, %v2110_v7, %v2107_v6 }
 0x2f4   : > { %v2114_v12 = vadd.f32 %v2113_v11, %v2100_v10 }
 0x2f6   : > { %v2115_v14 = vmul.f32 0.9, %v2114_v12 }
 0x2f8   : > { %v2116_v15 = vadd.f32 0.1, %v2115_v14 }
 0x2fa   : > { %2117 = vst.msk [vmem:[%s468_s25] sm:$0x1] %vm1953_vm0, %v2116_v15 }
 0x2fb PF: > { %s23_s23 = sadd.s32 1, %s2288_s23   ;;  %s4605_s21 = smov %s2284_s22 }
 0x2fc   : > { %p20_p5 = scmp.ge.s32.totalorder %s23_s23, 4   ;;  %s4606_s22 = smov %s4608_s24 }
 0x2fe   :  { %22 = sbr.rel (!%p20_p5) target bundleno = 2 (0x2), region = 109 }

</bundles_post_ra>
